<compile_context>
chip_gen: v6e
topology: v6e:2x2x1
jax: 0.10.0
libtpu: 0.0.40
codegen_flags: <defaults>
</compile_context>

<pallas_src>
import functools
from typing import NamedTuple

import jax
import jax.numpy as jnp
from jax.experimental import pallas as pl
from jax.experimental.pallas import tpu as pltpu

SELU_ALPHA = 1.6732632423543772
SELU_SCALE = 1.0507009873554805
LN_EPS = 1e-5
HIDDEN = 1024          # ResidualBlock hidden width (hard-coded in the PyTorch model)
LANES = 128            # minor-dim width of the `small` / `w_tall` slabs and output slab

# Row indices inside the `small` f32 slab (rows 0..7 are vectors, blocks start at row 8).
ROW_RB2_BIAS = 0       # [b_fc(F) | b_res(F)]
ROW_RB4_BIAS = 1       # [b_fc(E) | b_res(E)]
ROW_FC2_BIAS = 2       # [b(C)]
ROW_A1_GAMMA = 3
ROW_A1_BETA = 4
ROW_A2_GAMMA = 5
ROW_A2_BETA = 6
QKV1_ROW = 8           # attn1 [Wq | Wk | Wv] block starts here


class Dims(NamedTuple):
    input_features: int
    output_feature: int
    input_embedding: int
    num_classes: int
    combine: int
    r3_row: int        # rb3 weight-row offset inside w_wide (16-aligned for bf16 tiles)
    qkv2_row: int      # attn2 [Wq|Wk|Wv] row offset inside `small`
    fc2_row: int       # fc2 weight row offset inside `small`
    n_wide_rows: int
    n_small_rows: int


def _round_up(x, m):
    return (x + m - 1) // m * m


def make_dims(input_features, output_feature, input_embedding, num_classes):
    F, E, C = output_feature, input_embedding, num_classes
    combine = input_features + input_embedding
    assert 3 * F <= LANES and 2 * F <= LANES and 2 * E <= LANES and F + C <= LANES
    r3_row = _round_up(combine, 16)
    n_wide = _round_up(r3_row + F, 16)
    qkv_rows = _round_up(F, 8)
    qkv2_row = QKV1_ROW + qkv_rows
    fc2_row = qkv2_row + qkv_rows
    n_small = fc2_row + _round_up(E, 8)
    return Dims(input_features, F, E, C, combine, r3_row, qkv2_row, fc2_row,
                n_wide, n_small)


# ---------------------------------------------------------------------------
# In-kernel helpers (traced inside the fused Pallas kernel body; all f32 math)
# ---------------------------------------------------------------------------
def _selu(x):
    return SELU_SCALE * jnp.where(x > 0, x, SELU_ALPHA * (jnp.exp(x) - 1.0))


def _layernorm(x, gamma, beta):
    mean = jnp.mean(x, axis=-1, keepdims=True)
    var = jnp.mean((x - mean) ** 2, axis=-1, keepdims=True)
    return (x - mean) * jax.lax.rsqrt(var + LN_EPS) * gamma + beta


# ---------------------------------------------------------------------------
# Fused forward kernel
# ---------------------------------------------------------------------------
def fused_forward_kernel(xr_ref, xe_ref, w_wide_ref, w_tall_ref, bias_wide_ref,
                         small_ref, out_ref, x0_ref, *, dims):
    F, E, C = dims.output_feature, dims.input_embedding, dims.num_classes
    H = HIDDEN
    B = xr_ref.shape[0]
    inv_sqrt_f = 1.0 / float(F) ** 0.5

    def residual_block(x, w, bias, n_out):
        # One fused [fc | res] matmul per block: single bf16 cast, single MXU pass.
        y = jnp.dot(x.astype(w.dtype), w, preferred_element_type=jnp.float32) + bias
        return _selu(y[:, :n_out]) + y[:, n_out:2 * n_out]

    def self_attention(x, qkv_row, gamma_row, beta_row):
        # PyTorch SelfAttention reuses ONE nn.LayerNorm for x, Q, K and V.
        gamma = small_ref[gamma_row:gamma_row + 1, :F]
        beta = small_ref[beta_row:beta_row + 1, :F]
        xn = _layernorm(x, gamma, beta)
        # Fused [Wq | Wk | Wv] projection: one MXU invocation instead of three.
        qkv = jnp.dot(xn, small_ref[qkv_row:qkv_row + F, :],
                      preferred_element_type=jnp.float32)          # [B, 128]
        # TODO(synk): the 3 LNs could be batched into one (3B, F) call, but that needs a
        # lane->sublane restack; kept separate (XLU/EUP reduce slots overlap other work).
        q = _layernorm(qkv[:, :F], gamma, beta) * inv_sqrt_f   # pre-scale Q, not scores
        k = _layernorm(qkv[:, F:2 * F], gamma, beta)
        v = _layernorm(qkv[:, 2 * F:3 * F], gamma, beta)
        # Contract on dim 1 of both (Q @ K^T) without materializing a transpose.
        s = jax.lax.dot_general(q, k, (((1,), (1,)), ((), ())),
                                preferred_element_type=jnp.float32)
        s = s - jnp.max(s, axis=-1, keepdims=True)
        p = jnp.exp(s)
        attn = p * pl.reciprocal(jnp.sum(p, axis=-1, keepdims=True), approx=True)
        # TODO(synk): nn.Dropout(0.1) is identity in eval mode; training-mode random
        # masking (pltpu.prng_random_bits) omitted.
        return jnp.dot(attn, v, preferred_element_type=jnp.float32)

    # ---- torch.cat((input_rna, input_embedding), -1): two masked stores into scratch.
    x0_ref[:, :dims.input_features] = xr_ref[...]
    x0_ref[:, dims.input_features:dims.combine] = xe_ref[...]
    x0 = x0_ref[...]

    # ---- ResidualBlock 1 / 2
    x = residual_block(x0, w_wide_ref[:dims.combine, :], bias_wide_ref[0:1, :], H)
    x = residual_block(x, w_tall_ref[:H, :],
                       small_ref[ROW_RB2_BIAS:ROW_RB2_BIAS + 1, :], F)

    # ---- Attention 1 + Sigmoid
    a1 = self_attention(x, QKV1_ROW, ROW_A1_GAMMA, ROW_A1_BETA)
    rna = pl.reciprocal(1.0 + jnp.exp(-a1), approx=True)   # sigmoid via EUP reciprocal

    # ---- Attention 2
    x1 = self_attention(rna, dims.qkv2_row, ROW_A2_GAMMA, ROW_A2_BETA)

    # ---- ResidualBlock 3 / 4
    x1 = residual_block(x1, w_wide_ref[dims.r3_row:dims.r3_row + F, :],
                        bias_wide_ref[1:2, :], H)
    emb = residual_block(x1, w_tall_ref[H:2 * H, :],
                         small_ref[ROW_RB4_BIAS:ROW_RB4_BIAS + 1, :], E)

    # ---- fc2 (weight block is [E, 128] with zero-padded lanes -> lanes C:128 stay 0).
    logits = (jnp.dot(emb, small_ref[dims.fc2_row:dims.fc2_row + E, :],
                      preferred_element_type=jnp.float32)
              + small_ref[ROW_FC2_BIAS:ROW_FC2_BIAS + 1, :])

    # ---- Single lane-dense (B, 128) output slab: rna in [0:F], age logits in [F:F+C].
    out_ref[...] = jnp.zeros((B, LANES), jnp.float32)
    out_ref[:, :F] = rna
    out_ref[:, F:F + C] = logits[:, :C]


# ---------------------------------------------------------------------------
# Wrapper: single gridless pallas_call, everything VMEM-resident.
# ---------------------------------------------------------------------------
def make_prernamodel_forward(dims):
    kern = functools.partial(fused_forward_kernel, dims=dims)
    F, E, C, H = dims.output_feature, dims.input_embedding, dims.num_classes, HIDDEN

    @jax.jit
    def forward(packed, input_rna, input_embedding):
        B = input_rna.shape[0]
        flat = (input_rna, input_embedding, packed["w_wide"], packed["w_tall"],
                packed["bias_wide"], packed["small"])

        def vmem():
            return pl.BlockSpec(memory_space=pltpu.MemorySpace.VMEM)

        cost = pl.CostEstimate(
            flops=int(2 * B * (dims.combine * 2 * H + H * LANES
                               + 2 * (F * LANES + 2 * B * F)
                               + F * 2 * H + H * LANES + E * LANES)),
            transcendentals=int(B * (4 * H + 3 * F + 2 * E + 2 * B)),
            bytes_accessed=int(sum(a.size * a.dtype.itemsize for a in flat)
                               + B * LANES * 4),
        )
        packed_out = pl.pallas_call(
            kern,
            out_shape=jax.ShapeDtypeStruct((B, LANES), jnp.float32),
            in_specs=[vmem() for _ in flat],
            out_specs=vmem(),
            scratch_shapes=[pltpu.VMEM((B, dims.combine), jnp.float32)],
            compiler_params=pltpu.CompilerParams(vmem_limit_bytes=32 * 1024 * 1024),
            cost_estimate=cost,
        )(*flat)
        # TODO(synk): if B ever scales to >=128 rows, add a leading batch grid axis with
        # dimension_semantics=("parallel",) so v7x's two TensorCores split the rows;
        # at B=8 a serial grid on a latency-bound kernel is pure overhead.
        return packed_out[:, :F], packed_out[:, F:F + C]

    return forward


# ---------------------------------------------------------------------------
# Parameter construction (deterministic, synthetic; PyTorch init ranges) and packing.
# Linear weights are stored pre-transposed as [in_features, out_features].
# ---------------------------------------------------------------------------
def _linear_params(key, din, dout):
    kw, kb = jax.random.split(key)
    bound = 1.0 / (din ** 0.5)
    w = jax.random.uniform(kw, (din, dout), jnp.float32, -bound, bound)
    b = jax.random.uniform(kb, (dout,), jnp.float32, -bound, bound)
    return w, b


def _residual_block_params(key, din, dout):
    k1, k2 = jax.random.split(key)
    wfc, bfc = _linear_params(k1, din, dout)
    wres, bres = _linear_params(k2, din, dout)
    return dict(wfc=wfc, bfc=bfc, wres=wres, bres=bres)


def _attention_params(key, fdim):
    kq, kk, kv = jax.random.split(key, 3)
    return dict(
        wq=jax.random.normal(kq, (fdim, fdim), jnp.float32),   # torch.randn init
        wk=jax.random.normal(kk, (fdim, fdim), jnp.float32),
        wv=jax.random.normal(kv, (fdim, fdim), jnp.float32),
        gamma=jnp.ones((fdim,), jnp.float32),
        beta=jnp.zeros((fdim,), jnp.float32),
    )


def init_prernamodel_params(key, input_features, output_feature, input_embedding,
                            num_classes):
    combine = input_features + input_embedding
    keys = jax.random.split(key, 7)
    fc2_w, fc2_b = _linear_params(keys[6], input_embedding, num_classes)
    return dict(
        rb1=_residual_block_params(keys[0], combine, HIDDEN),
        rb2=_residual_block_params(keys[1], HIDDEN, output_feature),
        attn1=_attention_params(keys[2], output_feature),
        attn2=_attention_params(keys[3], output_feature),
        rb3=_residual_block_params(keys[4], output_feature, HIDDEN),
        rb4=_residual_block_params(keys[5], HIDDEN, input_embedding),
        fc2=dict(w=fc2_w, b=fc2_b),
    )


def pack_prernamodel_params(p, dims):
    """Pack logical params into 4 aligned slabs (done once, host-side)."""
    F, E, C, H = dims.output_feature, dims.input_embedding, dims.num_classes, HIDDEN

    # Wide bf16 weight slab: fused [fc | res] along the output (lane) axis.
    w_wide = jnp.zeros((dims.n_wide_rows, 2 * H), jnp.bfloat16)
    rb1 = jnp.concatenate([p["rb1"]["wfc"], p["rb1"]["wres"]], axis=1)
    rb3 = jnp.concatenate([p["rb3"]["wfc"], p["rb3"]["wres"]], axis=1)
    w_wide = w_wide.at[:dims.combine].set(rb1.astype(jnp.bfloat16))
    w_wide = w_wide.at[dims.r3_row:dims.r3_row + F].set(rb3.astype(jnp.bfloat16))

    # Tall bf16 weight slab: rb2 rows [0:H], rb4 rows [H:2H]; [fc | res] in lanes.
    w_tall = jnp.zeros((2 * H, LANES), jnp.bfloat16)
    rb2 = jnp.concatenate([p["rb2"]["wfc"], p["rb2"]["wres"]], axis=1)
    rb4 = jnp.concatenate([p["rb4"]["wfc"], p["rb4"]["wres"]], axis=1)
    w_tall = w_tall.at[:H, :2 * F].set(rb2.astype(jnp.bfloat16))
    w_tall = w_tall.at[H:, :2 * E].set(rb4.astype(jnp.bfloat16))

    # f32 bias slab for the two 1024-wide blocks ([b_fc | b_res] per row).
    bias_wide = jnp.stack([
        jnp.concatenate([p["rb1"]["bfc"], p["rb1"]["bres"]]),
        jnp.concatenate([p["rb3"]["bfc"], p["rb3"]["bres"]]),
    ]).astype(jnp.float32)

    # Small f32 slab [n_small_rows, 128]: biases, LN params, fused QKV blocks, fc2.
    small = jnp.zeros((dims.n_small_rows, LANES), jnp.float32)
    small = small.at[ROW_RB2_BIAS, :2 * F].set(
        jnp.concatenate([p["rb2"]["bfc"], p["rb2"]["bres"]]))
    small = small.at[ROW_RB4_BIAS, :2 * E].set(
        jnp.concatenate([p["rb4"]["bfc"], p["rb4"]["bres"]]))
    small = small.at[ROW_FC2_BIAS, :C].set(p["fc2"]["b"])
    small = small.at[ROW_A1_GAMMA, :F].set(p["attn1"]["gamma"])
    small = small.at[ROW_A1_BETA, :F].set(p["attn1"]["beta"])
    small = small.at[ROW_A2_GAMMA, :F].set(p["attn2"]["gamma"])
    small = small.at[ROW_A2_BETA, :F].set(p["attn2"]["beta"])
    qkv1 = jnp.concatenate([p["attn1"]["wq"], p["attn1"]["wk"], p["attn1"]["wv"]], axis=1)
    qkv2 = jnp.concatenate([p["attn2"]["wq"], p["attn2"]["wk"], p["attn2"]["wv"]], axis=1)
    small = small.at[QKV1_ROW:QKV1_ROW + F, :3 * F].set(qkv1)
    small = small.at[dims.qkv2_row:dims.qkv2_row + F, :3 * F].set(qkv2)
    small = small.at[dims.fc2_row:dims.fc2_row + E, :C].set(p["fc2"]["w"])

    return dict(w_wide=w_wide, w_tall=w_tall, bias_wide=bias_wide, small=small)


if __name__ == "__main__":
    B = 8
    INPUT_FEATURES = 24
    INPUT_EMBEDDING = 8
    OUTPUT_FEATURE = 16
    NUM_CLASSES = 4

    key = jax.random.PRNGKey(0)
    kp, kr, ke = jax.random.split(key, 3)

    dims = make_dims(INPUT_FEATURES, OUTPUT_FEATURE, INPUT_EMBEDDING, NUM_CLASSES)
    params = init_prernamodel_params(kp, INPUT_FEATURES, OUTPUT_FEATURE,
                                     INPUT_EMBEDDING, NUM_CLASSES)
    packed = pack_prernamodel_params(params, dims)

    input_rna = jax.random.normal(kr, (B, INPUT_FEATURES), jnp.float32)
    input_embedding = jax.random.normal(ke, (B, INPUT_EMBEDDING), jnp.float32)

    forward = make_prernamodel_forward(dims)
    rna_output, age_output = forward(packed, input_rna, input_embedding)
    jax.block_until_ready((rna_output, age_output))

    assert rna_output.shape == (B, OUTPUT_FEATURE)
    assert age_output.shape == (B, NUM_CLASSES)
    assert bool(jnp.all(jnp.isfinite(rna_output))) and bool(jnp.all(jnp.isfinite(age_output)))
    print("KERNEL_OK")
</pallas_src>

<mosaic_0001>
module attributes {stable_mosaic.version = 11 : i64} {
  func.func @fused_forward_kernel(%arg0: memref<8x24xf32, #tpu.memory_space<vmem>>, %arg1: memref<8x8xf32, #tpu.memory_space<vmem>>, %arg2: memref<48x2048xbf16, #tpu.memory_space<vmem>>, %arg3: memref<2048x128xbf16, #tpu.memory_space<vmem>>, %arg4: memref<2x2048xf32, #tpu.memory_space<vmem>>, %arg5: memref<48x128xf32, #tpu.memory_space<vmem>>, %arg6: memref<8x128xf32, #tpu.memory_space<vmem>>, %arg7: memref<8x32xf32, #tpu.memory_space<vmem>>) attributes {dimension_semantics = [], scalar_prefetch = 0 : i64, scratch_operands = 1 : i64, tpu.core_type = #tpu.core_type<tc>} {
    %c0 = arith.constant 0 : index
    %c0_0 = arith.constant 0 : index
    %0 = vector.load %arg0[%c0, %c0_0] : memref<8x24xf32, #tpu.memory_space<vmem>>, vector<8x24xf32>
    %c0_1 = arith.constant 0 : index
    %c0_2 = arith.constant 0 : index
    %1 = vector.load %arg7[%c0_1, %c0_2] : memref<8x32xf32, #tpu.memory_space<vmem>>, vector<8x24xf32>
    tpu.vector_store %arg7[%c0_1, %c0_2], %0 {strides = array<i32>} : memref<8x32xf32, #tpu.memory_space<vmem>>, vector<8x24xf32>,
    %c0_3 = arith.constant 0 : index
    %c0_4 = arith.constant 0 : index
    %2 = vector.load %arg1[%c0_3, %c0_4] : memref<8x8xf32, #tpu.memory_space<vmem>>, vector<8x8xf32>
    %c0_5 = arith.constant 0 : index
    %c24 = arith.constant 24 : index
    %3 = vector.load %arg7[%c0_5, %c24] : memref<8x32xf32, #tpu.memory_space<vmem>>, vector<8x8xf32>
    tpu.vector_store %arg7[%c0_5, %c24], %2 {strides = array<i32>} : memref<8x32xf32, #tpu.memory_space<vmem>>, vector<8x8xf32>,
    %c0_6 = arith.constant 0 : index
    %c0_7 = arith.constant 0 : index
    %4 = vector.load %arg7[%c0_6, %c0_7] : memref<8x32xf32, #tpu.memory_space<vmem>>, vector<8x32xf32>
    %c0_8 = arith.constant 0 : index
    %c0_9 = arith.constant 0 : index
    %5 = vector.load %arg2[%c0_8, %c0_9] : memref<48x2048xbf16, #tpu.memory_space<vmem>>, vector<32x2048xbf16>
    %c0_10 = arith.constant 0 : index
    %c0_11 = arith.constant 0 : index
    %6 = vector.load %arg4[%c0_10, %c0_11] : memref<2x2048xf32, #tpu.memory_space<vmem>>, vector<1x2048xf32>
    %7 = arith.truncf %4 : vector<8x32xf32> to vector<8x32xbf16>
    %cst = arith.constant dense<0.000000e+00> : vector<8x2048xf32>
    %8 = tpu.matmul %7, %5, %cst {dimension_numbers = #tpu.dot_dimension_numbers<[1], [0], [0], [1], [0, 0, 1, 1], [], []>} : vector<8x32xbf16>, vector<32x2048xbf16>, vector<8x2048xf32> -> vector<8x2048xf32>
    %9 = vector.broadcast %6 : vector<1x2048xf32> to vector<8x2048xf32>
    %10 = arith.addf %8, %9 : vector<8x2048xf32>
    %11 = vector.extract_strided_slice %10 {offsets = [0, 0], sizes = [8, 1024], strides = [1, 1]} : vector<8x2048xf32> to vector<8x1024xf32>
    %cst_12 = arith.constant 0.000000e+00 : f32
    %12 = vector.broadcast %cst_12 : f32 to vector<8x1024xf32>
    %13 = arith.cmpf ogt, %11, %12 : vector<8x1024xf32>
    %14 = math.exp %11 : vector<8x1024xf32>
    %cst_13 = arith.constant 1.000000e+00 : f32
    %15 = vector.broadcast %cst_13 : f32 to vector<8x1024xf32>
    %16 = arith.subf %14, %15 : vector<8x1024xf32>
    %cst_14 = arith.constant 1.67326319 : f32
    %17 = vector.broadcast %cst_14 : f32 to vector<8x1024xf32>
    %18 = arith.mulf %17, %16 : vector<8x1024xf32>
    %19 = arith.select %13, %11, %18 : vector<8x1024xi1>, vector<8x1024xf32>
    %cst_15 = arith.constant 1.05070102 : f32
    %20 = vector.broadcast %cst_15 : f32 to vector<8x1024xf32>
    %21 = arith.mulf %20, %19 : vector<8x1024xf32>
    %22 = vector.extract_strided_slice %10 {offsets = [0, 1024], sizes = [8, 1024], strides = [1, 1]} : vector<8x2048xf32> to vector<8x1024xf32>
    %23 = arith.addf %21, %22 : vector<8x1024xf32>
    %c0_16 = arith.constant 0 : index
    %c0_17 = arith.constant 0 : index
    %24 = vector.load %arg3[%c0_16, %c0_17] : memref<2048x128xbf16, #tpu.memory_space<vmem>>, vector<1024x128xbf16>
    %c0_18 = arith.constant 0 : index
    %c0_19 = arith.constant 0 : index
    %25 = vector.load %arg5[%c0_18, %c0_19] : memref<48x128xf32, #tpu.memory_space<vmem>>, vector<1x128xf32>
    %26 = arith.truncf %23 : vector<8x1024xf32> to vector<8x1024xbf16>
    %cst_20 = arith.constant dense<0.000000e+00> : vector<8x128xf32>
    %27 = tpu.matmul %26, %24, %cst_20 {dimension_numbers = #tpu.dot_dimension_numbers<[1], [0], [0], [1], [0, 0, 1, 1], [], []>} : vector<8x1024xbf16>, vector<1024x128xbf16>, vector<8x128xf32> -> vector<8x128xf32>
    %28 = vector.broadcast %25 : vector<1x128xf32> to vector<8x128xf32>
    %29 = arith.addf %27, %28 : vector<8x128xf32>
    %30 = vector.extract_strided_slice %29 {offsets = [0, 0], sizes = [8, 16], strides = [1, 1]} : vector<8x128xf32> to vector<8x16xf32>
    %cst_21 = arith.constant 0.000000e+00 : f32
    %31 = vector.broadcast %cst_21 : f32 to vector<8x16xf32>
    %32 = arith.cmpf ogt, %30, %31 : vector<8x16xf32>
    %33 = math.exp %30 : vector<8x16xf32>
    %cst_22 = arith.constant 1.000000e+00 : f32
    %34 = vector.broadcast %cst_22 : f32 to vector<8x16xf32>
    %35 = arith.subf %33, %34 : vector<8x16xf32>
    %cst_23 = arith.constant 1.67326319 : f32
    %36 = vector.broadcast %cst_23 : f32 to vector<8x16xf32>
    %37 = arith.mulf %36, %35 : vector<8x16xf32>
    %38 = arith.select %32, %30, %37 : vector<8x16xi1>, vector<8x16xf32>
    %cst_24 = arith.constant 1.05070102 : f32
    %39 = vector.broadcast %cst_24 : f32 to vector<8x16xf32>
    %40 = arith.mulf %39, %38 : vector<8x16xf32>
    %41 = vector.extract_strided_slice %29 {offsets = [0, 16], sizes = [8, 16], strides = [1, 1]} : vector<8x128xf32> to vector<8x16xf32>
    %42 = arith.addf %40, %41 : vector<8x16xf32>
    %c3 = arith.constant 3 : index
    %c0_25 = arith.constant 0 : index
    %43 = vector.load %arg5[%c3, %c0_25] : memref<48x128xf32, #tpu.memory_space<vmem>>, vector<1x16xf32>
    %c4 = arith.constant 4 : index
    %c0_26 = arith.constant 0 : index
    %44 = vector.load %arg5[%c4, %c0_26] : memref<48x128xf32, #tpu.memory_space<vmem>>, vector<1x16xf32>
    %cst_27 = arith.constant dense<0.000000e+00> : vector<8xf32>
    %45 = vector.multi_reduction <add>, %42, %cst_27 [1] : vector<8x16xf32> to vector<8xf32>
    %46 = vector.shape_cast %45 : vector<8xf32> to vector<8x1xf32>
    %cst_28 = arith.constant 1.600000e+01 : f32
    %47 = vector.broadcast %cst_28 : f32 to vector<8x1xf32>
    %48 = arith.divf %46, %47 : vector<8x1xf32>
    %49 = vector.broadcast %48 : vector<8x1xf32> to vector<8x16xf32>
    %50 = arith.subf %42, %49 : vector<8x16xf32>
    %51 = arith.mulf %50, %50 : vector<8x16xf32>
    %cst_29 = arith.constant dense<0.000000e+00> : vector<8xf32>
    %52 = vector.multi_reduction <add>, %51, %cst_29 [1] : vector<8x16xf32> to vector<8xf32>
    %53 = vector.shape_cast %52 : vector<8xf32> to vector<8x1xf32>
    %cst_30 = arith.constant 1.600000e+01 : f32
    %54 = vector.broadcast %cst_30 : f32 to vector<8x1xf32>
    %55 = arith.divf %53, %54 : vector<8x1xf32>
    %56 = vector.broadcast %48 : vector<8x1xf32> to vector<8x16xf32>
    %57 = arith.subf %42, %56 : vector<8x16xf32>
    %cst_31 = arith.constant 9.99999974E-6 : f32
    %58 = vector.broadcast %cst_31 : f32 to vector<8x1xf32>
    %59 = arith.addf %55, %58 : vector<8x1xf32>
    %60 = math.rsqrt %59 : vector<8x1xf32>
    %61 = vector.broadcast %60 : vector<8x1xf32> to vector<8x16xf32>
    %62 = arith.mulf %57, %61 : vector<8x16xf32>
    %63 = vector.broadcast %43 : vector<1x16xf32> to vector<8x16xf32>
    %64 = arith.mulf %62, %63 : vector<8x16xf32>
    %65 = vector.broadcast %44 : vector<1x16xf32> to vector<8x16xf32>
    %66 = arith.addf %64, %65 : vector<8x16xf32>
    %c8 = arith.constant 8 : index
    %c0_32 = arith.constant 0 : index
    %67 = vector.load %arg5[%c8, %c0_32] : memref<48x128xf32, #tpu.memory_space<vmem>>, vector<16x128xf32>
    %cst_33 = arith.constant dense<0.000000e+00> : vector<8x128xf32>
    %68 = tpu.matmul %66, %67, %cst_33 {dimension_numbers = #tpu.dot_dimension_numbers<[1], [0], [0], [1], [0, 0, 1, 1], [], []>} : vector<8x16xf32>, vector<16x128xf32>, vector<8x128xf32> -> vector<8x128xf32>
    %69 = vector.extract_strided_slice %68 {offsets = [0, 0], sizes = [8, 16], strides = [1, 1]} : vector<8x128xf32> to vector<8x16xf32>
    %cst_34 = arith.constant dense<0.000000e+00> : vector<8xf32>
    %70 = vector.multi_reduction <add>, %69, %cst_34 [1] : vector<8x16xf32> to vector<8xf32>
    %71 = vector.shape_cast %70 : vector<8xf32> to vector<8x1xf32>
    %cst_35 = arith.constant 1.600000e+01 : f32
    %72 = vector.broadcast %cst_35 : f32 to vector<8x1xf32>
    %73 = arith.divf %71, %72 : vector<8x1xf32>
    %74 = vector.broadcast %73 : vector<8x1xf32> to vector<8x16xf32>
    %75 = arith.subf %69, %74 : vector<8x16xf32>
    %76 = arith.mulf %75, %75 : vector<8x16xf32>
    %cst_36 = arith.constant dense<0.000000e+00> : vector<8xf32>
    %77 = vector.multi_reduction <add>, %76, %cst_36 [1] : vector<8x16xf32> to vector<8xf32>
    %78 = vector.shape_cast %77 : vector<8xf32> to vector<8x1xf32>
    %cst_37 = arith.constant 1.600000e+01 : f32
    %79 = vector.broadcast %cst_37 : f32 to vector<8x1xf32>
    %80 = arith.divf %78, %79 : vector<8x1xf32>
    %81 = vector.broadcast %73 : vector<8x1xf32> to vector<8x16xf32>
    %82 = arith.subf %69, %81 : vector<8x16xf32>
    %cst_38 = arith.constant 9.99999974E-6 : f32
    %83 = vector.broadcast %cst_38 : f32 to vector<8x1xf32>
    %84 = arith.addf %80, %83 : vector<8x1xf32>
    %85 = math.rsqrt %84 : vector<8x1xf32>
    %86 = vector.broadcast %85 : vector<8x1xf32> to vector<8x16xf32>
    %87 = arith.mulf %82, %86 : vector<8x16xf32>
    %88 = vector.broadcast %43 : vector<1x16xf32> to vector<8x16xf32>
    %89 = arith.mulf %87, %88 : vector<8x16xf32>
    %90 = vector.broadcast %44 : vector<1x16xf32> to vector<8x16xf32>
    %91 = arith.addf %89, %90 : vector<8x16xf32>
    %cst_39 = arith.constant 2.500000e-01 : f32
    %92 = vector.broadcast %cst_39 : f32 to vector<8x16xf32>
    %93 = arith.mulf %91, %92 : vector<8x16xf32>
    %94 = vector.extract_strided_slice %68 {offsets = [0, 16], sizes = [8, 16], strides = [1, 1]} : vector<8x128xf32> to vector<8x16xf32>
    %cst_40 = arith.constant dense<0.000000e+00> : vector<8xf32>
    %95 = vector.multi_reduction <add>, %94, %cst_40 [1] : vector<8x16xf32> to vector<8xf32>
    %96 = vector.shape_cast %95 : vector<8xf32> to vector<8x1xf32>
    %cst_41 = arith.constant 1.600000e+01 : f32
    %97 = vector.broadcast %cst_41 : f32 to vector<8x1xf32>
    %98 = arith.divf %96, %97 : vector<8x1xf32>
    %99 = vector.broadcast %98 : vector<8x1xf32> to vector<8x16xf32>
    %100 = arith.subf %94, %99 : vector<8x16xf32>
    %101 = arith.mulf %100, %100 : vector<8x16xf32>
    %cst_42 = arith.constant dense<0.000000e+00> : vector<8xf32>
    %102 = vector.multi_reduction <add>, %101, %cst_42 [1] : vector<8x16xf32> to vector<8xf32>
    %103 = vector.shape_cast %102 : vector<8xf32> to vector<8x1xf32>
    %cst_43 = arith.constant 1.600000e+01 : f32
    %104 = vector.broadcast %cst_43 : f32 to vector<8x1xf32>
    %105 = arith.divf %103, %104 : vector<8x1xf32>
    %106 = vector.broadcast %98 : vector<8x1xf32> to vector<8x16xf32>
    %107 = arith.subf %94, %106 : vector<8x16xf32>
    %cst_44 = arith.constant 9.99999974E-6 : f32
    %108 = vector.broadcast %cst_44 : f32 to vector<8x1xf32>
    %109 = arith.addf %105, %108 : vector<8x1xf32>
    %110 = math.rsqrt %109 : vector<8x1xf32>
    %111 = vector.broadcast %110 : vector<8x1xf32> to vector<8x16xf32>
    %112 = arith.mulf %107, %111 : vector<8x16xf32>
    %113 = vector.broadcast %43 : vector<1x16xf32> to vector<8x16xf32>
    %114 = arith.mulf %112, %113 : vector<8x16xf32>
    %115 = vector.broadcast %44 : vector<1x16xf32> to vector<8x16xf32>
    %116 = arith.addf %114, %115 : vector<8x16xf32>
    %117 = vector.extract_strided_slice %68 {offsets = [0, 32], sizes = [8, 16], strides = [1, 1]} : vector<8x128xf32> to vector<8x16xf32>
    %cst_45 = arith.constant dense<0.000000e+00> : vector<8xf32>
    %118 = vector.multi_reduction <add>, %117, %cst_45 [1] : vector<8x16xf32> to vector<8xf32>
    %119 = vector.shape_cast %118 : vector<8xf32> to vector<8x1xf32>
    %cst_46 = arith.constant 1.600000e+01 : f32
    %120 = vector.broadcast %cst_46 : f32 to vector<8x1xf32>
    %121 = arith.divf %119, %120 : vector<8x1xf32>
    %122 = vector.broadcast %121 : vector<8x1xf32> to vector<8x16xf32>
    %123 = arith.subf %117, %122 : vector<8x16xf32>
    %124 = arith.mulf %123, %123 : vector<8x16xf32>
    %cst_47 = arith.constant dense<0.000000e+00> : vector<8xf32>
    %125 = vector.multi_reduction <add>, %124, %cst_47 [1] : vector<8x16xf32> to vector<8xf32>
    %126 = vector.shape_cast %125 : vector<8xf32> to vector<8x1xf32>
    %cst_48 = arith.constant 1.600000e+01 : f32
    %127 = vector.broadcast %cst_48 : f32 to vector<8x1xf32>
    %128 = arith.divf %126, %127 : vector<8x1xf32>
    %129 = vector.broadcast %121 : vector<8x1xf32> to vector<8x16xf32>
    %130 = arith.subf %117, %129 : vector<8x16xf32>
    %cst_49 = arith.constant 9.99999974E-6 : f32
    %131 = vector.broadcast %cst_49 : f32 to vector<8x1xf32>
    %132 = arith.addf %128, %131 : vector<8x1xf32>
    %133 = math.rsqrt %132 : vector<8x1xf32>
    %134 = vector.broadcast %133 : vector<8x1xf32> to vector<8x16xf32>
    %135 = arith.mulf %130, %134 : vector<8x16xf32>
    %136 = vector.broadcast %43 : vector<1x16xf32> to vector<8x16xf32>
    %137 = arith.mulf %135, %136 : vector<8x16xf32>
    %138 = vector.broadcast %44 : vector<1x16xf32> to vector<8x16xf32>
    %139 = arith.addf %137, %138 : vector<8x16xf32>
    %cst_50 = arith.constant dense<0.000000e+00> : vector<8x8xf32>
    %140 = tpu.matmul %93, %116, %cst_50 {dimension_numbers = #tpu.dot_dimension_numbers<[1], [1], [0], [0], [0, 0, 1, 0], [], []>} : vector<8x16xf32>, vector<8x16xf32>, vector<8x8xf32> -> vector<8x8xf32>
    %cst_51 = arith.constant dense<0xFF800000> : vector<8xf32>
    %141 = vector.multi_reduction <maximumf>, %140, %cst_51 [1] : vector<8x8xf32> to vector<8xf32>
    %142 = vector.shape_cast %141 : vector<8xf32> to vector<8x1xf32>
    %143 = vector.broadcast %142 : vector<8x1xf32> to vector<8x8xf32>
    %144 = arith.subf %140, %143 : vector<8x8xf32>
    %145 = math.exp %144 : vector<8x8xf32>
    %cst_52 = arith.constant dense<0.000000e+00> : vector<8xf32>
    %146 = vector.multi_reduction <add>, %145, %cst_52 [1] : vector<8x8xf32> to vector<8xf32>
    %147 = vector.shape_cast %146 : vector<8xf32> to vector<8x1xf32>
    %148 = tpu.reciprocal %147 {approx = true} : vector<8x1xf32> -> vector<8x1xf32>
    %149 = vector.broadcast %148 : vector<8x1xf32> to vector<8x8xf32>
    %150 = arith.mulf %145, %149 : vector<8x8xf32>
    %cst_53 = arith.constant dense<0.000000e+00> : vector<8x16xf32>
    %151 = tpu.matmul %150, %139, %cst_53 {dimension_numbers = #tpu.dot_dimension_numbers<[1], [0], [0], [1], [0, 0, 1, 1], [], []>} : vector<8x8xf32>, vector<8x16xf32>, vector<8x16xf32> -> vector<8x16xf32>
    %cst_54 = arith.constant 0.000000e+00 : f32
    %152 = vector.broadcast %cst_54 : f32 to vector<8x16xf32>
    %153 = arith.subf %152, %151 : vector<8x16xf32>
    %154 = math.exp %153 : vector<8x16xf32>
    %cst_55 = arith.constant 1.000000e+00 : f32
    %155 = vector.broadcast %cst_55 : f32 to vector<8x16xf32>
    %156 = arith.addf %155, %154 : vector<8x16xf32>
    %157 = tpu.reciprocal %156 {approx = true} : vector<8x16xf32> -> vector<8x16xf32>
    %c5 = arith.constant 5 : index
    %c0_56 = arith.constant 0 : index
    %158 = vector.load %arg5[%c5, %c0_56] : memref<48x128xf32, #tpu.memory_space<vmem>>, vector<1x16xf32>
    %c6 = arith.constant 6 : index
    %c0_57 = arith.constant 0 : index
    %159 = vector.load %arg5[%c6, %c0_57] : memref<48x128xf32, #tpu.memory_space<vmem>>, vector<1x16xf32>
    %cst_58 = arith.constant dense<0.000000e+00> : vector<8xf32>
    %160 = vector.multi_reduction <add>, %157, %cst_58 [1] : vector<8x16xf32> to vector<8xf32>
    %161 = vector.shape_cast %160 : vector<8xf32> to vector<8x1xf32>
    %cst_59 = arith.constant 1.600000e+01 : f32
    %162 = vector.broadcast %cst_59 : f32 to vector<8x1xf32>
    %163 = arith.divf %161, %162 : vector<8x1xf32>
    %164 = vector.broadcast %163 : vector<8x1xf32> to vector<8x16xf32>
    %165 = arith.subf %157, %164 : vector<8x16xf32>
    %166 = arith.mulf %165, %165 : vector<8x16xf32>
    %cst_60 = arith.constant dense<0.000000e+00> : vector<8xf32>
    %167 = vector.multi_reduction <add>, %166, %cst_60 [1] : vector<8x16xf32> to vector<8xf32>
    %168 = vector.shape_cast %167 : vector<8xf32> to vector<8x1xf32>
    %cst_61 = arith.constant 1.600000e+01 : f32
    %169 = vector.broadcast %cst_61 : f32 to vector<8x1xf32>
    %170 = arith.divf %168, %169 : vector<8x1xf32>
    %171 = vector.broadcast %163 : vector<8x1xf32> to vector<8x16xf32>
    %172 = arith.subf %157, %171 : vector<8x16xf32>
    %cst_62 = arith.constant 9.99999974E-6 : f32
    %173 = vector.broadcast %cst_62 : f32 to vector<8x1xf32>
    %174 = arith.addf %170, %173 : vector<8x1xf32>
    %175 = math.rsqrt %174 : vector<8x1xf32>
    %176 = vector.broadcast %175 : vector<8x1xf32> to vector<8x16xf32>
    %177 = arith.mulf %172, %176 : vector<8x16xf32>
    %178 = vector.broadcast %158 : vector<1x16xf32> to vector<8x16xf32>
    %179 = arith.mulf %177, %178 : vector<8x16xf32>
    %180 = vector.broadcast %159 : vector<1x16xf32> to vector<8x16xf32>
    %181 = arith.addf %179, %180 : vector<8x16xf32>
    %c24_63 = arith.constant 24 : index
    %c0_64 = arith.constant 0 : index
    %182 = vector.load %arg5[%c24_63, %c0_64] : memref<48x128xf32, #tpu.memory_space<vmem>>, vector<16x128xf32>
    %cst_65 = arith.constant dense<0.000000e+00> : vector<8x128xf32>
    %183 = tpu.matmul %181, %182, %cst_65 {dimension_numbers = #tpu.dot_dimension_numbers<[1], [0], [0], [1], [0, 0, 1, 1], [], []>} : vector<8x16xf32>, vector<16x128xf32>, vector<8x128xf32> -> vector<8x128xf32>
    %184 = vector.extract_strided_slice %183 {offsets = [0, 0], sizes = [8, 16], strides = [1, 1]} : vector<8x128xf32> to vector<8x16xf32>
    %cst_66 = arith.constant dense<0.000000e+00> : vector<8xf32>
    %185 = vector.multi_reduction <add>, %184, %cst_66 [1] : vector<8x16xf32> to vector<8xf32>
    %186 = vector.shape_cast %185 : vector<8xf32> to vector<8x1xf32>
    %cst_67 = arith.constant 1.600000e+01 : f32
    %187 = vector.broadcast %cst_67 : f32 to vector<8x1xf32>
    %188 = arith.divf %186, %187 : vector<8x1xf32>
    %189 = vector.broadcast %188 : vector<8x1xf32> to vector<8x16xf32>
    %190 = arith.subf %184, %189 : vector<8x16xf32>
    %191 = arith.mulf %190, %190 : vector<8x16xf32>
    %cst_68 = arith.constant dense<0.000000e+00> : vector<8xf32>
    %192 = vector.multi_reduction <add>, %191, %cst_68 [1] : vector<8x16xf32> to vector<8xf32>
    %193 = vector.shape_cast %192 : vector<8xf32> to vector<8x1xf32>
    %cst_69 = arith.constant 1.600000e+01 : f32
    %194 = vector.broadcast %cst_69 : f32 to vector<8x1xf32>
    %195 = arith.divf %193, %194 : vector<8x1xf32>
    %196 = vector.broadcast %188 : vector<8x1xf32> to vector<8x16xf32>
    %197 = arith.subf %184, %196 : vector<8x16xf32>
    %cst_70 = arith.constant 9.99999974E-6 : f32
    %198 = vector.broadcast %cst_70 : f32 to vector<8x1xf32>
    %199 = arith.addf %195, %198 : vector<8x1xf32>
    %200 = math.rsqrt %199 : vector<8x1xf32>
    %201 = vector.broadcast %200 : vector<8x1xf32> to vector<8x16xf32>
    %202 = arith.mulf %197, %201 : vector<8x16xf32>
    %203 = vector.broadcast %158 : vector<1x16xf32> to vector<8x16xf32>
    %204 = arith.mulf %202, %203 : vector<8x16xf32>
    %205 = vector.broadcast %159 : vector<1x16xf32> to vector<8x16xf32>
    %206 = arith.addf %204, %205 : vector<8x16xf32>
    %cst_71 = arith.constant 2.500000e-01 : f32
    %207 = vector.broadcast %cst_71 : f32 to vector<8x16xf32>
    %208 = arith.mulf %206, %207 : vector<8x16xf32>
    %209 = vector.extract_strided_slice %183 {offsets = [0, 16], sizes = [8, 16], strides = [1, 1]} : vector<8x128xf32> to vector<8x16xf32>
    %cst_72 = arith.constant dense<0.000000e+00> : vector<8xf32>
    %210 = vector.multi_reduction <add>, %209, %cst_72 [1] : vector<8x16xf32> to vector<8xf32>
    %211 = vector.shape_cast %210 : vector<8xf32> to vector<8x1xf32>
    %cst_73 = arith.constant 1.600000e+01 : f32
    %212 = vector.broadcast %cst_73 : f32 to vector<8x1xf32>
    %213 = arith.divf %211, %212 : vector<8x1xf32>
    %214 = vector.broadcast %213 : vector<8x1xf32> to vector<8x16xf32>
    %215 = arith.subf %209, %214 : vector<8x16xf32>
    %216 = arith.mulf %215, %215 : vector<8x16xf32>
    %cst_74 = arith.constant dense<0.000000e+00> : vector<8xf32>
    %217 = vector.multi_reduction <add>, %216, %cst_74 [1] : vector<8x16xf32> to vector<8xf32>
    %218 = vector.shape_cast %217 : vector<8xf32> to vector<8x1xf32>
    %cst_75 = arith.constant 1.600000e+01 : f32
    %219 = vector.broadcast %cst_75 : f32 to vector<8x1xf32>
    %220 = arith.divf %218, %219 : vector<8x1xf32>
    %221 = vector.broadcast %213 : vector<8x1xf32> to vector<8x16xf32>
    %222 = arith.subf %209, %221 : vector<8x16xf32>
    %cst_76 = arith.constant 9.99999974E-6 : f32
    %223 = vector.broadcast %cst_76 : f32 to vector<8x1xf32>
    %224 = arith.addf %220, %223 : vector<8x1xf32>
    %225 = math.rsqrt %224 : vector<8x1xf32>
    %226 = vector.broadcast %225 : vector<8x1xf32> to vector<8x16xf32>
    %227 = arith.mulf %222, %226 : vector<8x16xf32>
    %228 = vector.broadcast %158 : vector<1x16xf32> to vector<8x16xf32>
    %229 = arith.mulf %227, %228 : vector<8x16xf32>
    %230 = vector.broadcast %159 : vector<1x16xf32> to vector<8x16xf32>
    %231 = arith.addf %229, %230 : vector<8x16xf32>
    %232 = vector.extract_strided_slice %183 {offsets = [0, 32], sizes = [8, 16], strides = [1, 1]} : vector<8x128xf32> to vector<8x16xf32>
    %cst_77 = arith.constant dense<0.000000e+00> : vector<8xf32>
    %233 = vector.multi_reduction <add>, %232, %cst_77 [1] : vector<8x16xf32> to vector<8xf32>
    %234 = vector.shape_cast %233 : vector<8xf32> to vector<8x1xf32>
    %cst_78 = arith.constant 1.600000e+01 : f32
    %235 = vector.broadcast %cst_78 : f32 to vector<8x1xf32>
    %236 = arith.divf %234, %235 : vector<8x1xf32>
    %237 = vector.broadcast %236 : vector<8x1xf32> to vector<8x16xf32>
    %238 = arith.subf %232, %237 : vector<8x16xf32>
    %239 = arith.mulf %238, %238 : vector<8x16xf32>
    %cst_79 = arith.constant dense<0.000000e+00> : vector<8xf32>
    %240 = vector.multi_reduction <add>, %239, %cst_79 [1] : vector<8x16xf32> to vector<8xf32>
    %241 = vector.shape_cast %240 : vector<8xf32> to vector<8x1xf32>
    %cst_80 = arith.constant 1.600000e+01 : f32
    %242 = vector.broadcast %cst_80 : f32 to vector<8x1xf32>
    %243 = arith.divf %241, %242 : vector<8x1xf32>
    %244 = vector.broadcast %236 : vector<8x1xf32> to vector<8x16xf32>
    %245 = arith.subf %232, %244 : vector<8x16xf32>
    %cst_81 = arith.constant 9.99999974E-6 : f32
    %246 = vector.broadcast %cst_81 : f32 to vector<8x1xf32>
    %247 = arith.addf %243, %246 : vector<8x1xf32>
    %248 = math.rsqrt %247 : vector<8x1xf32>
    %249 = vector.broadcast %248 : vector<8x1xf32> to vector<8x16xf32>
    %250 = arith.mulf %245, %249 : vector<8x16xf32>
    %251 = vector.broadcast %158 : vector<1x16xf32> to vector<8x16xf32>
    %252 = arith.mulf %250, %251 : vector<8x16xf32>
    %253 = vector.broadcast %159 : vector<1x16xf32> to vector<8x16xf32>
    %254 = arith.addf %252, %253 : vector<8x16xf32>
    %cst_82 = arith.constant dense<0.000000e+00> : vector<8x8xf32>
    %255 = tpu.matmul %208, %231, %cst_82 {dimension_numbers = #tpu.dot_dimension_numbers<[1], [1], [0], [0], [0, 0, 1, 0], [], []>} : vector<8x16xf32>, vector<8x16xf32>, vector<8x8xf32> -> vector<8x8xf32>
    %cst_83 = arith.constant dense<0xFF800000> : vector<8xf32>
    %256 = vector.multi_reduction <maximumf>, %255, %cst_83 [1] : vector<8x8xf32> to vector<8xf32>
    %257 = vector.shape_cast %256 : vector<8xf32> to vector<8x1xf32>
    %258 = vector.broadcast %257 : vector<8x1xf32> to vector<8x8xf32>
    %259 = arith.subf %255, %258 : vector<8x8xf32>
    %260 = math.exp %259 : vector<8x8xf32>
    %cst_84 = arith.constant dense<0.000000e+00> : vector<8xf32>
    %261 = vector.multi_reduction <add>, %260, %cst_84 [1] : vector<8x8xf32> to vector<8xf32>
    %262 = vector.shape_cast %261 : vector<8xf32> to vector<8x1xf32>
    %263 = tpu.reciprocal %262 {approx = true} : vector<8x1xf32> -> vector<8x1xf32>
    %264 = vector.broadcast %263 : vector<8x1xf32> to vector<8x8xf32>
    %265 = arith.mulf %260, %264 : vector<8x8xf32>
    %cst_85 = arith.constant dense<0.000000e+00> : vector<8x16xf32>
    %266 = tpu.matmul %265, %254, %cst_85 {dimension_numbers = #tpu.dot_dimension_numbers<[1], [0], [0], [1], [0, 0, 1, 1], [], []>} : vector<8x8xf32>, vector<8x16xf32>, vector<8x16xf32> -> vector<8x16xf32>
    %c32 = arith.constant 32 : index
    %c0_86 = arith.constant 0 : index
    %267 = vector.load %arg2[%c32, %c0_86] : memref<48x2048xbf16, #tpu.memory_space<vmem>>, vector<16x2048xbf16>
    %c1 = arith.constant 1 : index
    %c0_87 = arith.constant 0 : index
    %268 = vector.load %arg4[%c1, %c0_87] : memref<2x2048xf32, #tpu.memory_space<vmem>>, vector<1x2048xf32>
    %269 = arith.truncf %266 : vector<8x16xf32> to vector<8x16xbf16>
    %cst_88 = arith.constant dense<0.000000e+00> : vector<8x2048xf32>
    %270 = tpu.matmul %269, %267, %cst_88 {dimension_numbers = #tpu.dot_dimension_numbers<[1], [0], [0], [1], [0, 0, 1, 1], [], []>} : vector<8x16xbf16>, vector<16x2048xbf16>, vector<8x2048xf32> -> vector<8x2048xf32>
    %271 = vector.broadcast %268 : vector<1x2048xf32> to vector<8x2048xf32>
    %272 = arith.addf %270, %271 : vector<8x2048xf32>
    %273 = vector.extract_strided_slice %272 {offsets = [0, 0], sizes = [8, 1024], strides = [1, 1]} : vector<8x2048xf32> to vector<8x1024xf32>
    %cst_89 = arith.constant 0.000000e+00 : f32
    %274 = vector.broadcast %cst_89 : f32 to vector<8x1024xf32>
    %275 = arith.cmpf ogt, %273, %274 : vector<8x1024xf32>
    %276 = math.exp %273 : vector<8x1024xf32>
    %cst_90 = arith.constant 1.000000e+00 : f32
    %277 = vector.broadcast %cst_90 : f32 to vector<8x1024xf32>
    %278 = arith.subf %276, %277 : vector<8x1024xf32>
    %cst_91 = arith.constant 1.67326319 : f32
    %279 = vector.broadcast %cst_91 : f32 to vector<8x1024xf32>
    %280 = arith.mulf %279, %278 : vector<8x1024xf32>
    %281 = arith.select %275, %273, %280 : vector<8x1024xi1>, vector<8x1024xf32>
    %cst_92 = arith.constant 1.05070102 : f32
    %282 = vector.broadcast %cst_92 : f32 to vector<8x1024xf32>
    %283 = arith.mulf %282, %281 : vector<8x1024xf32>
    %284 = vector.extract_strided_slice %272 {offsets = [0, 1024], sizes = [8, 1024], strides = [1, 1]} : vector<8x2048xf32> to vector<8x1024xf32>
    %285 = arith.addf %283, %284 : vector<8x1024xf32>
    %c1024 = arith.constant 1024 : index
    %c0_93 = arith.constant 0 : index
    %286 = vector.load %arg3[%c1024, %c0_93] : memref<2048x128xbf16, #tpu.memory_space<vmem>>, vector<1024x128xbf16>
    %c1_94 = arith.constant 1 : index
    %c0_95 = arith.constant 0 : index
    %287 = vector.load %arg5[%c1_94, %c0_95] : memref<48x128xf32, #tpu.memory_space<vmem>>, vector<1x128xf32>
    %288 = arith.truncf %285 : vector<8x1024xf32> to vector<8x1024xbf16>
    %cst_96 = arith.constant dense<0.000000e+00> : vector<8x128xf32>
    %289 = tpu.matmul %288, %286, %cst_96 {dimension_numbers = #tpu.dot_dimension_numbers<[1], [0], [0], [1], [0, 0, 1, 1], [], []>} : vector<8x1024xbf16>, vector<1024x128xbf16>, vector<8x128xf32> -> vector<8x128xf32>
    %290 = vector.broadcast %287 : vector<1x128xf32> to vector<8x128xf32>
    %291 = arith.addf %289, %290 : vector<8x128xf32>
    %292 = vector.extract_strided_slice %291 {offsets = [0, 0], sizes = [8, 8], strides = [1, 1]} : vector<8x128xf32> to vector<8x8xf32>
    %cst_97 = arith.constant 0.000000e+00 : f32
    %293 = vector.broadcast %cst_97 : f32 to vector<8x8xf32>
    %294 = arith.cmpf ogt, %292, %293 : vector<8x8xf32>
    %295 = math.exp %292 : vector<8x8xf32>
    %cst_98 = arith.constant 1.000000e+00 : f32
    %296 = vector.broadcast %cst_98 : f32 to vector<8x8xf32>
    %297 = arith.subf %295, %296 : vector<8x8xf32>
    %cst_99 = arith.constant 1.67326319 : f32
    %298 = vector.broadcast %cst_99 : f32 to vector<8x8xf32>
    %299 = arith.mulf %298, %297 : vector<8x8xf32>
    %300 = arith.select %294, %292, %299 : vector<8x8xi1>, vector<8x8xf32>
    %cst_100 = arith.constant 1.05070102 : f32
    %301 = vector.broadcast %cst_100 : f32 to vector<8x8xf32>
    %302 = arith.mulf %301, %300 : vector<8x8xf32>
    %303 = vector.extract_strided_slice %291 {offsets = [0, 8], sizes = [8, 8], strides = [1, 1]} : vector<8x128xf32> to vector<8x8xf32>
    %304 = arith.addf %302, %303 : vector<8x8xf32>
    %c40 = arith.constant 40 : index
    %c0_101 = arith.constant 0 : index
    %305 = vector.load %arg5[%c40, %c0_101] : memref<48x128xf32, #tpu.memory_space<vmem>>, vector<8x128xf32>
    %cst_102 = arith.constant dense<0.000000e+00> : vector<8x128xf32>
    %306 = tpu.matmul %304, %305, %cst_102 {dimension_numbers = #tpu.dot_dimension_numbers<[1], [0], [0], [1], [0, 0, 1, 1], [], []>} : vector<8x8xf32>, vector<8x128xf32>, vector<8x128xf32> -> vector<8x128xf32>
    %c2 = arith.constant 2 : index
    %c0_103 = arith.constant 0 : index
    %307 = vector.load %arg5[%c2, %c0_103] : memref<48x128xf32, #tpu.memory_space<vmem>>, vector<1x128xf32>
    %308 = vector.broadcast %307 : vector<1x128xf32> to vector<8x128xf32>
    %309 = arith.addf %306, %308 : vector<8x128xf32>
    %cst_104 = arith.constant 0.000000e+00 : f32
    %310 = vector.broadcast %cst_104 : f32 to vector<8x128xf32>
    %c0_105 = arith.constant 0 : index
    %c0_106 = arith.constant 0 : index
    %311 = vector.load %arg6[%c0_105, %c0_106] : memref<8x128xf32, #tpu.memory_space<vmem>>, vector<8x128xf32>
    tpu.vector_store %arg6[%c0_105, %c0_106], %310 {strides = array<i32>} : memref<8x128xf32, #tpu.memory_space<vmem>>, vector<8x128xf32>,
    %c0_107 = arith.constant 0 : index
    %c0_108 = arith.constant 0 : index
    %312 = vector.load %arg6[%c0_107, %c0_108] : memref<8x128xf32, #tpu.memory_space<vmem>>, vector<8x16xf32>
    tpu.vector_store %arg6[%c0_107, %c0_108], %157 {strides = array<i32>} : memref<8x128xf32, #tpu.memory_space<vmem>>, vector<8x16xf32>,
    %313 = vector.extract_strided_slice %309 {offsets = [0, 0], sizes = [8, 4], strides = [1, 1]} : vector<8x128xf32> to vector<8x4xf32>
    %c0_109 = arith.constant 0 : index
    %c16 = arith.constant 16 : index
    %314 = vector.load %arg6[%c0_109, %c16] : memref<8x128xf32, #tpu.memory_space<vmem>>, vector<8x4xf32>
    tpu.vector_store %arg6[%c0_109, %c16], %313 {strides = array<i32>} : memref<8x128xf32, #tpu.memory_space<vmem>>, vector<8x4xf32>,
    return
  }
}

</mosaic_0001>

<bundles_post_ra>
// kernel: forward.1
= control target key start
LH: loop header
LB: loop body
LE: loop exit
PB: predicated region body
PF: predicated region fallthrough
CT: control target
= control target key end

     0   :  { %11 = vsyncpa [#allocation4], 0  ;;  %s4709_s0 = inlined_call_operand.hbm [shape: f32[8,24], index: 0, kind: input, shape index: {}]   ;;  %s4710_s1 = inlined_call_operand.vmem [shape: f32[8,8], index: 1, kind: input, shape index: {}]   ;;  %s4711_s2 = inlined_call_operand.hbm [shape: bf16[48,2048], index: 2, kind: input, shape index: {}]   ;;  %s4712_s3 = inlined_call_operand.hbm [shape: bf16[2048,128], index: 3, kind: input, shape index: {}]   ;;  %s4713_s4 = inlined_call_operand.hbm [shape: f32[2,2048], index: 4, kind: input, shape index: {}]   ;;  %s4714_s5 = inlined_call_operand.hbm [shape: f32[48,128], index: 5, kind: input, shape index: {}]   ;;  %s4715_s6 = inlined_call_operand.vmem [shape: f32[8,128], index: 6, kind: output, shape index: {}]  }
   0x1   :  { %12 = vsyncpa [#allocation6], 0 }
   0x2   :  { %13 = vsyncpa [#allocation9], 0  ;;  %s4303_s21 = smov [#allocation5]  }
   0x3   :  { %s31_s22 = sshll.u32 %s4303_s21, 4  ;;  %s32_s22 = int_to_ptr.vmem [resolvable:$true] %s31_s22 }
   0x4   :  { %s4205_s23 = scalar_lea.vmem %s32_s22, 6144  ;;  %p4210_p1 = scmp.lt.s32.totalorder %s32_s22, %s32_s22 }
   0x5   :  { %p4206_p0 = scmp.ne.s32.totalorder %s32_s22, %s4205_s23  ;;  %p4211_p2 = scmp.lt.s32.totalorder %s4205_s23, %s4205_s23 }
   0x7   :  { %p4212_p3 = por %p4211_p2, %p4210_p1 }
   0x9   :  { %p4213_p4 = pnand %p4212_p3, %p4206_p0 }
   0xb   :  { %4216 = shalt.err (!%p4213_p4)
}
   0xc   :  { %s4304_s24 = smov 1024   ;;  %s4305_s25 = smov 64  }
   0xd   :  { %37 = dma.hbm_to_vmem [thread:$0]  %s4711_s2, 6144, %s32_s22, [#allocation6], %s4304_s24, %s4304_s24, %s4305_s25  }
   0xe   :  { %s4306_s28 = smov [#allocation8]   ;;  %s4307_s30 = smov [#allocation3]  }
   0xf   :  { %s56_s29 = sshll.u32 %s4306_s28, 4  ;;  %s20_s7 = sshll.u32 %s4307_s30, 4  ;;  %s57_s29 = int_to_ptr.vmem [resolvable:$true] %s56_s29  ;;  %s21_s7 = int_to_ptr.vmem [resolvable:$true] %s20_s7 }
  0x10   :  { %s4225_s8 = scalar_lea.vmem %s57_s29, 512  ;;  %p4230_p6 = scmp.lt.s32.totalorder %s57_s29, %s57_s29 }
  0x11   :  { %p4226_p5 = scmp.ne.s32.totalorder %s57_s29, %s4225_s8  ;;  %p4231_p7 = scmp.lt.s32.totalorder %s4225_s8, %s4225_s8 }
  0x13   :  { %p4232_p8 = por %p4231_p7, %p4230_p6 }
  0x15   :  { %p4233_p9 = pnand %p4232_p8, %p4226_p5 }
  0x17   :  { %4236 = shalt.err (!%p4233_p9)
}
  0x18   :  { %59 = dma.hbm_to_vmem [thread:$0]  %s4713_s4, 512, %s57_s29, [#allocation9]  }
  0x19   :  { %s4245_s11 = scalar_lea.vmem %s21_s7, 128  ;;  %p4250_p11 = scmp.lt.s32.totalorder %s21_s7, %s21_s7 }
  0x1a   :  { %p4246_p10 = scmp.ne.s32.totalorder %s21_s7, %s4245_s11  ;;  %p4251_p12 = scmp.lt.s32.totalorder %s4245_s11, %s4245_s11 }
  0x1c   :  { %p4252_p13 = por %p4251_p12, %p4250_p11 }
  0x1e   :  { %p4253_p0 = pnand %p4252_p13, %p4246_p10 }
  0x20   :  { %4256 = shalt.err (!%p4253_p0)
}
  0x21   :  { %23 = dma.hbm_to_vmem [thread:$0]  %s4709_s0, 128, %s21_s7, [#allocation4]  }
  0x22   :  { %s4308_s13 = smov [#allocation7]  }
  0x23   :  { %s43_s14 = sshll.u32 %s4308_s13, 4  ;;  %s44_s14 = int_to_ptr.vmem [resolvable:$true] %s43_s14 }
  0x24   :  { %s4265_s15 = scalar_lea.vmem %s44_s14, 16384  ;;  %p4270_p2 = scmp.lt.s32.totalorder %s44_s14, %s44_s14 }
  0x25   :  { %p4266_p1 = scmp.ne.s32.totalorder %s44_s14, %s4265_s15  ;;  %p4271_p3 = scmp.lt.s32.totalorder %s4265_s15, %s4265_s15 }
  0x27   :  { %p4272_p4 = por %p4271_p3, %p4270_p2 }
  0x29   :  { %p4273_p5 = pnand %p4272_p4, %p4266_p1 }
  0x2b   :  { %4276 = shalt.err (!%p4273_p5)
}
  0x2c   :  { %s4309_s4 = smov 4   ;;  %s4310_s18 = smov [#allocation10]  }
  0x2d   :  { %49 = dma.hbm_to_vmem [thread:$0]  %s4712_s3, 16384, %s44_s14, [#allocation6], %s4305_s25, %s4305_s25, %s4309_s4  }
  0x2e   :  { %s65_s19 = sshll.u32 %s4310_s18, 4  ;;  %s66_s19 = int_to_ptr.vmem [resolvable:$true] %s65_s19 }
  0x2f   :  { %s4285_s0 = scalar_lea.vmem %s66_s19, 768  ;;  %p4290_p7 = scmp.lt.s32.totalorder %s66_s19, %s66_s19 }
  0x30   :  { %p4286_p6 = scmp.ne.s32.totalorder %s66_s19, %s4285_s0  ;;  %p4291_p8 = scmp.lt.s32.totalorder %s4285_s0, %s4285_s0 }
  0x32   :  { %p4292_p9 = por %p4291_p8, %p4290_p7 }
  0x34   :  { %p4293_p10 = pnand %p4292_p9, %p4286_p6 }
  0x36   :  { %4296 = shalt.err (!%p4293_p10)
}
  0x37   :  { %s4311_s20 = smov 128   ;;  %s4312_s21 = smov 8  }
  0x38   :  { %71 = dma.hbm_to_vmem [thread:$0]  %s4714_s5, 768, %s66_s19, [#allocation9], %s4311_s20, %s4311_s20, %s4312_s21  }
  0x39   :  { %4297 = dma.done.wait [#allocation4], 128  }
  0x3a   :  { %4298 = vsyncadd [#allocation4], 4294967168 }
  0x3b   :  { %4299 = dma.done.wait [#allocation6], 22528  }
  0x3c   :  { %4300 = vsyncadd [#allocation6], 4294944768 }
  0x3d   :  { %4301 = dma.done.wait [#allocation9], 1280  }
  0x3e   :  { %4302 = vsyncadd [#allocation9], 4294966016  ;;  %v4313_v0 = vmov 0   ;;  %vm89_vm0 = vcmask 195584   ;;  %v91_v1 = vld [vmem:[%s4710_s1] sm:$0xff]  ;;  %v88_v2 = vld [vmem:[#allocation3] sm:$0xff] }
  0x3f   :  { %413 = vmatprep.mubr.bf16.mxu0 %v4313_v0  ;;  %454 = vmatprep.mubr.bf16.mxu1 %v4313_v0  ;;  %v115_v3 = vld [vmem:[#allocation5 + $0x80] sm:$0xff]  ;;  %s4314_s25 = smov 24   ;;  %90 = vst.msk [vmem:[#allocation2] sm:$0xff] %vm89_vm0, %v88_v2  ;;  %v116_v5 = vld [vmem:[#allocation5 + $0x88] sm:$0xff]  ;;  %v117_v16 = vld [vmem:[#allocation5 + $0x90] sm:$0xff]  ;;  %vm96_vm1 = vcmask 261312  }
  0x40   :  { %93 = vrot.lane.b32.xlu0 %v91_v1, %s4314_s25  ;;  %v123_v4 = vld [vmem:[#allocation5 + $0xc0] sm:$0xff]  ;;  %v124_v6 = vld [vmem:[#allocation5 + $0xc8] sm:$0xff]  ;;  %v125_v17 = vld [vmem:[#allocation5 + $0xd0] sm:$0xff]  ;;  %vm377_vm2 = vcmask 261120   ;;  %s4315_s1 = smov 112   ;;  %vm1472_vm12 = vcmask 130048  }
  0x41   :  { %v3546_v7 = vcombine.high %v115_v3, %v123_v4  ;;  %v3548_v8 = vcombine.high %v116_v5, %v124_v6  ;;  %v3545_v9 = vcombine.low %v115_v3, %v123_v4  ;;  %v3547_v10 = vcombine.low %v116_v5, %v124_v6  ;;  %v99_v11 = vld [vmem:[#allocation5] sm:$0xff]  ;;  %v100_v13 = vld [vmem:[#allocation5 + $0x8] sm:$0xff]  ;;  %v118_v20 = vld [vmem:[#allocation5 + $0x98] sm:$0xff]  ;;  %s4318_s27 = smov 16   ;;  %s4319_s28 = smov 96  }
  0x42   :  { %v107_v12 = vld [vmem:[#allocation5 + $0x40] sm:$0xff]  ;;  %v108_v15 = vld [vmem:[#allocation5 + $0x48] sm:$0xff]  ;;  %v3549_v19 = vcombine.low %v117_v16, %v125_v17  ;;  %v126_v21 = vld [vmem:[#allocation5 + $0xd8] sm:$0xff]  ;;  %v3550_v25 = vcombine.high %v117_v16, %v125_v17  ;;  %vm4317_vm13 = vmmov 0   ;;  %vm1725_vm14 = vcmask 64512   ;;  %s4320_s29 = smov 32  }
  0x43   :  { %v3530_v14 = vcombine.high %v99_v11, %v107_v12  ;;  %393 = vmatprep.subr.bf16.mxu0 %v3546_v7  ;;  %434 = vmatprep.subr.bf16.mxu1 %v3548_v8  ;;  %v3532_v18 = vcombine.high %v100_v13, %v108_v15  ;;  %v3529_v22 = vcombine.low %v99_v11, %v107_v12  ;;  %v101_v28 = vld [vmem:[#allocation5 + $0x10] sm:$0xff]  ;;  %v102_v30 = vld [vmem:[#allocation5 + $0x18] sm:$0xff]  ;;  %v119_v36 = vld [vmem:[#allocation5 + $0xa0] sm:$0xff]  ;;  %s4321_s8 = smov 120  }
  0x44   :  { %394 = vmatpush1.bf16.msra.mxu0 %v3545_v9  ;;  %435 = vmatpush1.bf16.msra.mxu1 %v3547_v10  ;;  %v3531_v23 = vcombine.low %v100_v13, %v108_v15  ;;  %v3551_v24 = vcombine.low %v118_v20, %v126_v21  ;;  %v3552_v26 = vcombine.high %v118_v20, %v126_v21  ;;  %v109_v29 = vld [vmem:[#allocation5 + $0x50] sm:$0xff]  ;;  %v110_v31 = vld [vmem:[#allocation5 + $0x58] sm:$0xff]  ;;  %v127_v37 = vld [vmem:[#allocation5 + $0xe0] sm:$0xff] }
  0x45   :  { %395 = vmatprep.subr.bf16.mxu0 %v3530_v14  ;;  %436 = vmatprep.subr.bf16.mxu1 %v3532_v18  ;;  %v3534_v34 = vcombine.high %v101_v28, %v109_v29  ;;  %v3536_v35 = vcombine.high %v102_v30, %v110_v31  ;;  %v120_v38 = vld [vmem:[#allocation5 + $0xa8] sm:$0xff]  ;;  %v3533_v40 = vcombine.low %v101_v28, %v109_v29  ;;  %v103_v44 = vld [vmem:[#allocation5 + $0x20] sm:$0xff]  ;;  %v121_v52 = vld [vmem:[#allocation5 + $0xb0] sm:$0xff] }
  0x46   :  { %v128_v39 = vld [vmem:[#allocation5 + $0xe8] sm:$0xff]  ;;  %v3535_v41 = vcombine.low %v102_v30, %v110_v31  ;;  %v3554_v42 = vcombine.high %v119_v36, %v127_v37  ;;  %v111_v45 = vld [vmem:[#allocation5 + $0x60] sm:$0xff]  ;;  %v3553_v48 = vcombine.low %v119_v36, %v127_v37  ;;  %v129_v53 = vld [vmem:[#allocation5 + $0xf0] sm:$0xff] }
  0x47   :  { %v3556_v43 = vcombine.high %v120_v38, %v128_v39  ;;  %v104_v46 = vld [vmem:[#allocation5 + $0x28] sm:$0xff]  ;;  %v3555_v49 = vcombine.low %v120_v38, %v128_v39  ;;  %v3538_v50 = vcombine.high %v103_v44, %v111_v45  ;;  %v122_v54 = vld [vmem:[#allocation5 + $0xb8] sm:$0xff]  ;;  %v3537_v56 = vcombine.low %v103_v44, %v111_v45  ;;  %v105_v60 = vld [vmem:[#allocation5 + $0x30] sm:$0xff] }
  0x48   :  { %396 = vmatpush1.bf16.msra.mxu0 %v3529_v22  ;;  %437 = vmatpush1.bf16.msra.mxu1 %v3531_v23  ;;  %v112_v47 = vld [vmem:[#allocation5 + $0x68] sm:$0xff]  ;;  %v130_v55 = vld [vmem:[#allocation5 + $0xf8] sm:$0xff]  ;;  %v3558_v58 = vcombine.high %v121_v52, %v129_v53  ;;  %v113_v61 = vld [vmem:[#allocation5 + $0x70] sm:$0xff]  ;;  %v3557_v1 = vcombine.low %v121_v52, %v129_v53 }
  0x49   :  { %475 = vmatprep.subr.bf16.mxu0 %v3550_v25  ;;  %516 = vmatprep.subr.bf16.mxu1 %v3552_v26  ;;  %v3540_v51 = vcombine.high %v104_v46, %v112_v47  ;;  %v3539_v57 = vcombine.low %v104_v46, %v112_v47  ;;  %v3560_v59 = vcombine.high %v122_v54, %v130_v55  ;;  %v106_v62 = vld [vmem:[#allocation5 + $0x38] sm:$0xff]  ;;  %v4009_v11 = vld [vmem:[#allocation7 + $0x70] sm:$0xff]   ;;  %v4013_v15 = vld [vmem:[#allocation7 + $0x68] sm:$0xff]  }
  0x4a   :  { %v114_v63 = vld [vmem:[#allocation5 + $0x78] sm:$0xff]  ;;  %v3559_v2 = vcombine.low %v122_v54, %v130_v55  ;;  %v3542_v3 = vcombine.high %v105_v60, %v113_v61  ;;  %v3541_v5 = vcombine.low %v105_v60, %v113_v61  ;;  %v4010_v12 = vld [vmem:[#allocation7 + $0xf0] sm:$0xff]   ;;  %v4014_v16 = vld [vmem:[#allocation7 + $0xe8] sm:$0xff]  }
  0x4b   :  { %v3544_v4 = vcombine.high %v106_v62, %v114_v63  ;;  %v3543_v6 = vcombine.low %v106_v62, %v114_v63  ;;  %v4005_v7 = vld [vmem:[#allocation7 + $0x78] sm:$0xff]   ;;  %v4011_v13 = vld [vmem:[#allocation7 + $0x30] sm:$0xff]   ;;  %v4015_v17 = vld [vmem:[#allocation7 + $0x28] sm:$0xff]  }
  0x4c   :  { %v4006_v8 = vld [vmem:[#allocation7 + $0xf8] sm:$0xff]   ;;  %v4012_v14 = vld [vmem:[#allocation7 + $0xb0] sm:$0xff]   ;;  %v4016_v18 = vld [vmem:[#allocation7 + $0xa8] sm:$0xff]  }
  0x4d   :  { %v4007_v9 = vld [vmem:[#allocation7 + $0x38] sm:$0xff]   ;;  %v4018_v20 = vld [vmem:[#allocation7 + $0xe0] sm:$0xff]   ;;  %v4026_v28 = vld [vmem:[#allocation7 + $0xd0] sm:$0xff]  }
  0x4e   :  { %v4008_v10 = vld [vmem:[#allocation7 + $0xb8] sm:$0xff]   ;;  %v4019_v21 = vld [vmem:[#allocation7 + $0x20] sm:$0xff]   ;;  %v4027_v29 = vld [vmem:[#allocation7 + $0x10] sm:$0xff]  }
  0x4f   :  { %v4020_v22 = vld [vmem:[#allocation7 + $0xa0] sm:$0xff]   ;;  %v4021_v23 = vld [vmem:[#allocation7 + $0x58] sm:$0xff]   ;;  %v4028_v30 = vld [vmem:[#allocation7 + $0x90] sm:$0xff]  }
  0x50   :  { %v4023_v25 = vld [vmem:[#allocation7 + $0x18] sm:$0xff]   ;;  %v4029_v31 = vld [vmem:[#allocation7 + $0x48] sm:$0xff]   ;;  %v4034_v36 = vld [vmem:[#allocation7 + $0xc0] sm:$0xff]  }
  0x51   :  { %v4024_v26 = vld [vmem:[#allocation7 + $0x98] sm:$0xff]   ;;  %v4035_v37 = vld [vmem:[#allocation7] sm:$0xff]  }
  0x52   :  { %v4036_v38 = vld [vmem:[#allocation7 + $0x80] sm:$0xff]   ;;  %v4037_v39 = vld [vmem:[#allocation7 + $0x178] sm:$0xff]  }
  0x53   :  { %v4408_v45 = vld [vmem:[#allocation8] ss:$2 sm:$0xff] }
  0xb2   :  { %v94_v27 = vpop.permute.xlu0 %93 }
  0xb3   :  { %97 = vst.msk [vmem:[#allocation2] sm:$0xff] %vm96_vm1, %v94_v27  ;;  %v4025_v27 = vld [vmem:[#allocation7 + $0x50] sm:$0xff]  }
  0xba   :  { %v98_v32 = vld [vmem:[#allocation2] sm:$0xff] }
  0xbb   :  { %v4380_v33 = vpack.c.bf16 %v98_v32, %v98_v32  ;;  %v4030_v32 = vld [vmem:[#allocation7 + $0xc8] sm:$0xff]  }
  0xbd   :  { %3561 = vmatmul.mubr.msk.bf16.vlgmr.msra.gmra.mxu0 %vm377_vm2, %v4380_v33  ;;  %3562 = vmatmul.mubr.msk.bf16.vlgmr.msra.gmra.mxu1 %vm377_vm2, %v4380_v33 }
  0xbe   :  { %476 = vmatpush1.bf16.msra.mxu0 %v3549_v19  ;;  %517 = vmatpush1.bf16.msra.mxu1 %v3551_v24  ;;  %v4017_v19 = vld [vmem:[#allocation7 + $0x60] sm:$0xff]   ;;  %v4022_v24 = vld [vmem:[#allocation7 + $0xd8] sm:$0xff]  }
  0xbf   :  { %477 = vmatprep.subr.bf16.mxu0 %v3534_v34  ;;  %518 = vmatprep.subr.bf16.mxu1 %v3536_v35  ;;  %v4032_v34 = vld [vmem:[#allocation7 + $0x88] sm:$0xff]   ;;  %v4033_v35 = vld [vmem:[#allocation7 + $0x40] sm:$0xff]  }
  0xc0   :  { %495 = vmatprep.mubr.bf16.mxu0 %v4313_v0  ;;  %536 = vmatprep.mubr.bf16.mxu1 %v4313_v0 }
  0xc2   :  { %478 = vmatpush1.bf16.msra.mxu0 %v3533_v40  ;;  %519 = vmatpush1.bf16.msra.mxu1 %v3535_v41  ;;  %v4038_v40 = vld [vmem:[#allocation7 + $0x1f8] sm:$0xff]   ;;  %v137_v41 = vlaneseq }
  0xc3   :  { %557 = vmatprep.subr.bf16.mxu0 %v3554_v42  ;;  %598 = vmatprep.subr.bf16.mxu1 %v3556_v43 }
  0xc4   :  { %v138_v42 = vshrl.u32 %v137_v41, 7 }
  0xc5   :  { %3563 = vmatmul.mubr.msk.bf16.vlgmr.msra.gmra.mxu0 %vm377_vm2, %v4380_v33  ;;  %3564 = vmatmul.mubr.msk.bf16.vlgmr.msra.gmra.mxu1 %vm377_vm2, %v4380_v33 }
  0xc6   :  { %558 = vmatpush1.bf16.msra.mxu0 %v3553_v48  ;;  %599 = vmatpush1.bf16.msra.mxu1 %v3555_v49  ;;  %v4404_v43 = vsub.s32 0, %v138_v42  ;;  %v4406_v44 = vsub.s32 2, %v138_v42  ;;  %v4410_v46 = vsub.s32 1, %v138_v42  ;;  %v4412_v47 = vsub.s32 3, %v138_v42 }
  0xc7   :  { %559 = vmatprep.subr.bf16.mxu0 %v3538_v50  ;;  %600 = vmatprep.subr.bf16.mxu1 %v3540_v51 }
  0xc8   :  { %577 = vmatprep.mubr.bf16.mxu0 %v4313_v0  ;;  %618 = vmatprep.mubr.bf16.mxu1 %v4313_v0  ;;  %v140_v48 = vrot.slane %v4408_v45, %v4404_v43  ;;  %v148_v49 = vrot.slane %v4408_v45, %v4406_v44  ;;  %v144_v52 = vrot.slane %v4408_v45, %v4410_v46 }
  0xc9   :  { %v152_v53 = vrot.slane %v4408_v45, %v4412_v47 }
  0xca   :  { %560 = vmatpush1.bf16.msra.mxu0 %v3537_v56  ;;  %601 = vmatpush1.bf16.msra.mxu1 %v3539_v57 }
  0xcb   :  { %639 = vmatprep.subr.bf16.mxu0 %v3558_v58  ;;  %680 = vmatprep.subr.bf16.mxu1 %v3560_v59 }
  0xcd   :  { %3565 = vmatmul.mubr.msk.bf16.vlgmr.msra.gmra.mxu0 %vm377_vm2, %v4380_v33  ;;  %3566 = vmatmul.mubr.msk.bf16.vlgmr.msra.gmra.mxu1 %vm377_vm2, %v4380_v33 }
  0xce   :  { %640 = vmatpush1.bf16.msra.mxu0 %v3557_v1  ;;  %681 = vmatpush1.bf16.msra.mxu1 %v3559_v2  ;;  %v4432_v1 = vsub.s32 5, %v138_v42  ;;  %v4434_v2 = vsub.s32 7, %v138_v42 }
  0xcf   :  { %641 = vmatprep.subr.bf16.mxu0 %v3542_v3  ;;  %682 = vmatprep.subr.bf16.mxu1 %v3544_v4 }
  0xd0   :  { %659 = vmatprep.mubr.bf16.mxu0 %v4313_v0  ;;  %700 = vmatprep.mubr.bf16.mxu1 %v4313_v0 }
  0xd2   :  { %642 = vmatpush1.bf16.msra.mxu0 %v3541_v5  ;;  %683 = vmatpush1.bf16.msra.mxu1 %v3543_v6 }
  0xd3   :  { %3755 = vmatprep.subr.bf16.mxu0 %v4005_v7  ;;  %3777 = vmatprep.subr.bf16.mxu1 %v4006_v8 }
  0xd5   :  { %3567 = vmatmul.mubr.msk.bf16.vlgmr.msra.gmra.mxu0 %vm377_vm2, %v4380_v33  ;;  %3568 = vmatmul.mubr.msk.bf16.vlgmr.msra.gmra.mxu1 %vm377_vm2, %v4380_v33  ;;  %v4031_v33 = vld [vmem:[#allocation7 + $0x8] sm:$0xff]  }
  0xd6   :  { %3756 = vmatpush3.bf16.msra.mxu0 %v4007_v9  ;;  %3778 = vmatpush3.bf16.msra.mxu1 %v4008_v10  ;;  %v160_v9 = vrot.slane %v4408_v45, %v4432_v1  ;;  %v168_v10 = vrot.slane %v4408_v45, %v4434_v2 }
  0xd7   :  { %3757 = vmatprep.subr.bf16.mxu0 %v4009_v11  ;;  %3779 = vmatprep.subr.bf16.mxu1 %v4010_v12 }
  0xda   :  { %3758 = vmatpush3.bf16.msra.mxu0 %v4011_v13  ;;  %3780 = vmatpush3.bf16.msra.mxu1 %v4012_v14 }
  0xdb   :  { %3759 = vmatprep.subr.bf16.mxu0 %v4013_v15  ;;  %3781 = vmatprep.subr.bf16.mxu1 %v4014_v16 }
  0xde   :  { %3760 = vmatpush3.bf16.msra.mxu0 %v4015_v17  ;;  %3782 = vmatpush3.bf16.msra.mxu1 %v4016_v18  ;;  %v4446_v17 = vsub.s32 4, %v138_v42  ;;  %v4448_v18 = vsub.s32 6, %v138_v42 }
  0xdf   :  { %3761 = vmatprep.subr.bf16.mxu0 %v4017_v19  ;;  %3783 = vmatprep.subr.bf16.mxu1 %v4018_v20 }
  0xe2   :  { %3762 = vmatpush3.bf16.msra.mxu0 %v4019_v21  ;;  %3784 = vmatpush3.bf16.msra.mxu1 %v4020_v22 }
  0xe3   :  { %3763 = vmatprep.subr.bf16.mxu0 %v4021_v23  ;;  %3785 = vmatprep.subr.bf16.mxu1 %v4022_v24 }
  0xe6   :  { %3764 = vmatpush3.bf16.msra.mxu0 %v4023_v25  ;;  %3786 = vmatpush3.bf16.msra.mxu1 %v4024_v26  ;;  %v156_v25 = vrot.slane %v4408_v45, %v4446_v17  ;;  %v4454_v26 = vld [vmem:[#allocation8 + $0x10] ss:$2 sm:$0xff] }
  0xe7   :  { %3765 = vmatprep.subr.bf16.mxu0 %v4025_v27  ;;  %3787 = vmatprep.subr.bf16.mxu1 %v4026_v28  ;;  %v164_v28 = vrot.slane %v4408_v45, %v4448_v18  ;;  %v176_v41 = vrot.slane %v4454_v26, %v4410_v46 }
  0xea   :  { %3766 = vmatpush3.bf16.msra.mxu0 %v4027_v29  ;;  %3788 = vmatpush3.bf16.msra.mxu1 %v4028_v30 }
  0xeb   :  { %3767 = vmatprep.subr.bf16.mxu0 %v4029_v31  ;;  %3789 = vmatprep.subr.bf16.mxu1 %v4030_v32 }
  0xee   :  { %3768 = vmatpush3.bf16.msra.mxu0 %v4031_v33  ;;  %3790 = vmatpush3.bf16.msra.mxu1 %v4032_v34  ;;  %v172_v34 = vrot.slane %v4454_v26, %v4404_v43 }
  0xef   :  { %3769 = vmatprep.subr.bf16.mxu0 %v4033_v35  ;;  %3791 = vmatprep.subr.bf16.mxu1 %v4034_v36 }
  0xf2   :  { %3770 = vmatpush3.bf16.msra.mxu0 %v4035_v37  ;;  %3792 = vmatpush3.bf16.msra.mxu1 %v4036_v38 }
  0xf3   :  { %3799 = vmatprep.subr.bf16.mxu0 %v4037_v39  ;;  %3821 = vmatprep.subr.bf16.mxu1 %v4038_v40  ;;  %v180_v40 = vrot.slane %v4454_v26, %v4406_v44 }
 0x17d   :  { %v415_v50 = vpop.f32.mrf.mxu0  ;;  %v456_v51 = vpop.f32.mrf.mxu1 }
 0x17e   :  { %v4422_v54 = vadd.f32 %v415_v50, %v140_v48  ;;  %v4424_v55 = vadd.f32 %v456_v51, %v148_v49 }
 0x17f   :  { %v417_v56 = vpop.f32.mrf.mxu0  ;;  %v458_v57 = vpop.f32.mrf.mxu1 }
 0x180   :  { %v717_v58 = vmul.f32 1.442695, %v4422_v54  ;;  %v721_v59 = vmul.f32 1.442695, %v4424_v55  ;;  %v4428_v60 = vadd.f32 %v417_v56, %v144_v52  ;;  %v4430_v61 = vadd.f32 %v458_v57, %v152_v53 }
 0x181   :  { %v419_v62 = vpop.f32.mrf.mxu0  ;;  %v460_v63 = vpop.f32.mrf.mxu1  ;;  %vm709_vm3 = vcmp.gt.f32.partialorder %v4422_v54, 0.0  ;;  %vm711_vm4 = vcmp.gt.f32.partialorder %v4424_v55, 0.0  ;;  %v184_v56 = vrot.slane %v4454_v26, %v4412_v47 }
 0x182   :  { %4133 = vpow2.f32 %v717_v58  ;;  %v719_v3 = vmul.f32 1.442695, %v4428_v60  ;;  %v723_v6 = vmul.f32 1.442695, %v4430_v61  ;;  %vm710_vm5 = vcmp.gt.f32.partialorder %v4428_v60, 0.0 }
 0x183   :  { %4135 = vpow2.f32 %v721_v59  ;;  %v420_v4 = vpop.f32.mrf.mxu0  ;;  %v461_v5 = vpop.f32.mrf.mxu1  ;;  %vm712_vm6 = vcmp.gt.f32.partialorder %v4430_v61, 0.0 }
 0x184   :  { %4137 = vpow2.f32 %v719_v3 }
 0x185   :  { %v497_v7 = vpop.f32.mrf.mxu0  ;;  %v538_v8 = vpop.f32.mrf.mxu1  ;;  %4139 = vpow2.f32 %v723_v6 }
 0x186   :  { %v4460_v38 = vadd.f32 %v497_v7, %v156_v25  ;;  %v4467_v48 = vadd.f32 %v538_v8, %v164_v28 }
 0x187   :  { %v499_v11 = vpop.f32.mrf.mxu0  ;;  %v540_v12 = vpop.f32.mrf.mxu1 }
 0x188   :  { %v4442_v13 = vadd.f32 %v499_v11, %v160_v9  ;;  %v4444_v14 = vadd.f32 %v540_v12, %v168_v10  ;;  %v725_v3 = vmul.f32 1.442695, %v4460_v38  ;;  %vm713_vm9 = vcmp.gt.f32.partialorder %v4460_v38, 0.0 }
 0x189   :  { %v501_v15 = vpop.f32.mrf.mxu0  ;;  %v542_v16 = vpop.f32.mrf.mxu1  ;;  %vm715_vm10 = vcmp.gt.f32.partialorder %v4467_v48, 0.0 }
 0x18a   :  { %v727_v19 = vmul.f32 1.442695, %v4442_v13  ;;  %v731_v22 = vmul.f32 1.442695, %v4444_v14  ;;  %vm714_vm7 = vcmp.gt.f32.partialorder %v4442_v13, 0.0  ;;  %vm716_vm8 = vcmp.gt.f32.partialorder %v4444_v14, 0.0 }
 0x18b   :  { %v502_v20 = vpop.f32.mrf.mxu0  ;;  %v543_v21 = vpop.f32.mrf.mxu1 }
 0x18c   :  { %4141 = vpow2.f32 %v727_v19 }
 0x18d   :  { %v579_v23 = vpop.f32.mrf.mxu0  ;;  %v620_v24 = vpop.f32.mrf.mxu1  ;;  %4143 = vpow2.f32 %v731_v22 }
 0x18e   :  { %v580_v6 = vadd.f32 %v579_v23, %v172_v34  ;;  %v621_v10 = vadd.f32 %v620_v24, %v180_v40  ;;  %4145 = vpow2.f32 %v725_v3  ;;  %v4046_v3 = vld [vmem:[#allocation7 + $0x1e8] sm:$0xff]  }
 0x18f   :  { %v4134_v27 = vpop.eup %4133  ;;  %v581_v29 = vpop.f32.mrf.mxu0 }
 0x190   :  { %v622_v30 = vpop.f32.mrf.mxu1  ;;  %v4136_v31 = vpop.eup %4135  ;;  %v3569_v32 = vadd.f32 -1.0, %v4134_v27 }
 0x191   :  { %v3571_v33 = vadd.f32 -1.0, %v4136_v31  ;;  %v583_v35 = vpop.f32.mrf.mxu0  ;;  %v4138_v37 = vpop.eup %4137  ;;  %v623_v16 = vadd.f32 %v622_v30, %v184_v56 }
 0x192   :  { %v624_v36 = vpop.f32.mrf.mxu1  ;;  %v741_v39 = vmul.f32 1.6732632, %v3569_v32  ;;  %v4140_v42 = vpop.eup %4139  ;;  %v3570_v45 = vadd.f32 -1.0, %v4138_v37  ;;  %v4040_v37 = vld [vmem:[#allocation7 + $0x1b8] sm:$0xff]  }
 0x193   :  { %v743_v49 = vmul.f32 1.6732632, %v3571_v33  ;;  %v584_v50 = vpop.f32.mrf.mxu0  ;;  %v3572_v52 = vadd.f32 -1.0, %v4140_v42  ;;  %v4039_v33 = vld [vmem:[#allocation7 + $0x138] sm:$0xff]   ;;  %v200_v36 = vrot.slane %v4454_v26, %v4434_v2  ;;  %v4042_v42 = vld [vmem:[#allocation7 + $0x1f0] sm:$0xff]  }
 0x194   :  { %v625_v51 = vpop.f32.mrf.mxu1  ;;  %v749_v53 = vsel %vm709_vm3, %v4422_v54, %v741_v39  ;;  %v742_v59 = vmul.f32 1.6732632, %v3570_v45  ;;  %v729_v54 = vmul.f32 1.442695, %v4467_v48  ;;  %v4041_v39 = vld [vmem:[#allocation7 + $0x170] sm:$0xff]  }
 0x195   :  { %v757_v57 = vmul.f32 1.050701, %v749_v53  ;;  %v751_v58 = vsel %vm711_vm4, %v4424_v55, %v743_v49  ;;  %v4475_v62 = vpop.f32.mrf.mxu0  ;;  %v744_v5 = vmul.f32 1.6732632, %v3572_v52  ;;  %v582_v55 = vadd.f32 %v581_v29, %v176_v41  ;;  %v4043_v52 = vld [vmem:[#allocation7 + $0x130] sm:$0xff]  }
 0x196   :  { %v4477_v63 = vpop.f32.mrf.mxu1  ;;  %v759_v4 = vmul.f32 1.050701, %v751_v58  ;;  %v750_v7 = vsel %vm710_vm5, %v4428_v60, %v742_v59  ;;  %4147 = vpow2.f32 %v729_v54  ;;  %v4045_v58 = vld [vmem:[#allocation7 + $0x168] sm:$0xff]  }
 0x197   :  { %v663_v8 = vpop.f32.mrf.mxu0  ;;  %v758_v11 = vmul.f32 1.050701, %v750_v7  ;;  %v752_v12 = vsel %vm712_vm6, %v4430_v61, %v744_v5  ;;  %v765_v15 = vadd.f32 %v757_v57, %v580_v6  ;;  %v192_v61 = vrot.slane %v4454_v26, %v4432_v1  ;;  %v4044_v57 = vld [vmem:[#allocation7 + $0x1b0] sm:$0xff]   ;;  %v4047_v5 = vld [vmem:[#allocation7 + $0x128] sm:$0xff]   ;;  %v4049_v6 = vld [vmem:[#allocation7 + $0x160] sm:$0xff]  }
 0x198   :  { %v704_v9 = vpop.f32.mrf.mxu1  ;;  %v760_v19 = vmul.f32 1.050701, %v752_v12  ;;  %v767_v25 = vadd.f32 %v759_v4, %v621_v10  ;;  %v4050_v7 = vld [vmem:[#allocation7 + $0x1e0] sm:$0xff]  }
 0x199   :  { %v665_v20 = vpop.f32.mrf.mxu0  ;;  %v4142_v22 = vpop.eup %4141  ;;  %v766_v27 = vadd.f32 %v758_v11, %v582_v55  ;;  %v902_v30 = vpack.c.bf16 %v765_v15, %v765_v15  ;;  %v664_v49 = vadd.f32 %v663_v8, %v192_v61  ;;  %v705_v53 = vadd.f32 %v704_v9, %v200_v36  ;;  %v4051_v10 = vld [vmem:[#allocation7 + $0x120] sm:$0xff]   ;;  %v4053_v11 = vld [vmem:[#allocation7 + $0x158] sm:$0xff]  }
 0x19a   :  { %v706_v21 = vpop.f32.mrf.mxu1  ;;  %v4144_v28 = vpop.eup %4143  ;;  %v3574_v23 = vadd.f32 -1.0, %v4142_v22  ;;  %v768_v60 = vadd.f32 %v760_v19, %v623_v16  ;;  %v904_v40 = vpack.c.bf16 %v767_v25, %v767_v25  ;;  %v4052_v55 = vld [vmem:[#allocation7 + $0x1a0] sm:$0xff]   ;;  %v4054_v15 = vld [vmem:[#allocation7 + $0x1d8] sm:$0xff]   ;;  %v4058_v25 = vld [vmem:[#allocation7 + $0x1d0] sm:$0xff]   ;;  %v196_v61 = vrot.slane %v4454_v26, %v4448_v18 }
 0x19b   :  { %v666_v31 = vpop.f32.mrf.mxu0  ;;  %v3576_v24 = vadd.f32 -1.0, %v4144_v28  ;;  %v903_v29 = vpack.c.bf16 %v766_v27, %v766_v27  ;;  %v4146_v8 = vpop.eup %4145  ;;  %v4055_v19 = vld [vmem:[#allocation7 + $0x118] sm:$0xff]   ;;  %v4057_v21 = vld [vmem:[#allocation7 + $0x150] sm:$0xff]  }
 0x19c   :  { %v707_v32 = vpop.f32.mrf.mxu1  ;;  %v905_v34 = vpack.c.bf16 %v768_v60, %v768_v60  ;;  %v746_v35 = vmul.f32 1.6732632, %v3574_v23  ;;  %v3573_v12 = vadd.f32 -1.0, %v4146_v8  ;;  %v4056_v20 = vld [vmem:[#allocation7 + $0x198] sm:$0xff]   ;;  %v4059_v28 = vld [vmem:[#allocation7 + $0x110] sm:$0xff]   ;;  %v4061_v60 = vld [vmem:[#allocation7 + $0x148] sm:$0xff]  }
 0x19d   :  { %v748_v41 = vmul.f32 1.6732632, %v3576_v24  ;;  %1330 = vmatprep.mubr.bf16.mxu0 %v903_v29  ;;  %v4060_v23 = vld [vmem:[#allocation7 + $0x190] sm:$0xff]   ;;  %v4062_v32 = vld [vmem:[#allocation7 + $0x1c8] sm:$0xff]   ;;  %v188_v24 = vrot.slane %v4454_v26, %v4446_v17  ;;  %v4068_v26 = vld [vmem:[#allocation7 + $0x180] sm:$0xff]  }
 0x19e   :  { %v754_v45 = vsel %vm714_vm7, %v4442_v13, %v746_v35  ;;  %1370 = vmatprep.mubr.bf16.mxu1 %v905_v34  ;;  %1331 = vmatmul.mubr.bf16.vlgmr.msra.gmra.mxu0 %v902_v30  ;;  %v745_v22 = vmul.f32 1.6732632, %v3573_v12  ;;  %v4064_v34 = vld [vmem:[#allocation7 + $0x188] sm:$0xff]   ;;  %v4065_v35 = vld [vmem:[#allocation7 + $0x140] sm:$0xff]  }
 0x19f   :  { %v762_v50 = vmul.f32 1.050701, %v754_v45  ;;  %v756_v51 = vsel %vm716_vm8, %v4444_v14, %v748_v41  ;;  %1371 = vmatmul.mubr.bf16.vlgmr.msra.gmra.mxu1 %v904_v40  ;;  %3800 = vmatpush3.bf16.msra.mxu0 %v4039_v33  ;;  %v4048_v14 = vld [vmem:[#allocation7 + $0x1a8] sm:$0xff]   ;;  %v4067_v40 = vld [vmem:[#allocation7 + $0x100] sm:$0xff]   ;;  %vm3520_vm8 = vcmask 162944  }
 0x1a0   :  { %v764_v56 = vmul.f32 1.050701, %v756_v51  ;;  %3822 = vmatpush3.bf16.msra.mxu1 %v4040_v37  ;;  %3801 = vmatprep.subr.bf16.mxu0 %v4041_v39  ;;  %v753_v31 = vsel %vm713_vm9, %v4460_v38, %v745_v22  ;;  %v4063_v33 = vld [vmem:[#allocation7 + $0x108] sm:$0xff]   ;;  %v4066_v38 = vld [vmem:[#allocation7 + $0x1c0] sm:$0xff]   ;;  %v662_v37 = vadd.f32 %v4475_v62, %v188_v24  ;;  %v703_v39 = vadd.f32 %v4477_v63, %v196_v61 }
 0x1a1   :  { %v770_v59 = vadd.f32 %v762_v50, %v664_v49  ;;  %3823 = vmatprep.subr.bf16.mxu1 %v4042_v42  ;;  %v761_v30 = vmul.f32 1.050701, %v753_v31  ;;  %v4316_v61 = vmov 0.0  }
 0x1a2   :  { %v772_v4 = vadd.f32 %v764_v56, %v705_v53  ;;  %3514 = vst [vmem:[%s4715_s6] sm:$0xff] %v4316_v61 }
 0x1a3   :  { %v907_v13 = vpack.c.bf16 %v770_v59, %v770_v59  ;;  %3802 = vmatpush3.bf16.msra.mxu0 %v4043_v52  ;;  %v4148_v9 = vpop.eup %4147 }
 0x1a4   :  { %v909_v54 = vpack.c.bf16 %v772_v4, %v772_v4  ;;  %3824 = vmatpush3.bf16.msra.mxu1 %v4044_v57  ;;  %3803 = vmatprep.subr.bf16.mxu0 %v4045_v58  ;;  %v3575_v16 = vadd.f32 -1.0, %v4148_v9  ;;  %v3577_v58 = vld [vmem:[#allocation10] ss:$0 sm:$0xff] }
 0x1a5   :  { %1410 = vmatprep.mubr.bf16.mxu0 %v907_v13  ;;  %3825 = vmatprep.subr.bf16.mxu1 %v4046_v3 }
 0x1a6   :  { %1450 = vmatprep.mubr.bf16.mxu1 %v909_v54  ;;  %v747_v27 = vmul.f32 1.6732632, %v3575_v16 }
 0x1a7   :  { %3804 = vmatpush3.bf16.msra.mxu0 %v4047_v5 }
 0x1a8   :  { %3826 = vmatpush3.bf16.msra.mxu1 %v4048_v14  ;;  %3805 = vmatprep.subr.bf16.mxu0 %v4049_v6  ;;  %v755_v29 = vsel %vm715_vm10, %v4467_v48, %v747_v27  ;;  %v769_v48 = vadd.f32 %v761_v30, %v662_v37 }
 0x1a9   :  { %3827 = vmatprep.subr.bf16.mxu1 %v4050_v7  ;;  %v763_v36 = vmul.f32 1.050701, %v755_v29  ;;  %v1498_v29 = vld [vmem:[#allocation10 + $0x10] sm:$0xff] }
 0x1aa   :  { %v906_v42 = vpack.c.bf16 %v769_v48, %v769_v48 }
 0x1ab   :  { %3806 = vmatpush3.bf16.msra.mxu0 %v4051_v10  ;;  %v771_v41 = vadd.f32 %v763_v36, %v703_v39  ;;  %v4519_v39 = vld [vmem:[#allocation10 + $0x4] ss:$0 sm:$0xff] }
 0x1ac   :  { %3828 = vmatpush3.bf16.msra.mxu1 %v4052_v55  ;;  %3807 = vmatprep.subr.bf16.mxu0 %v4053_v11 }
 0x1ad   :  { %3829 = vmatprep.subr.bf16.mxu1 %v4054_v15  ;;  %v908_v45 = vpack.c.bf16 %v771_v41, %v771_v41 }
 0x1af   :  { %3808 = vmatpush3.bf16.msra.mxu0 %v4055_v19 }
 0x1b0   :  { %3830 = vmatpush3.bf16.msra.mxu1 %v4056_v20  ;;  %3809 = vmatprep.subr.bf16.mxu0 %v4057_v21 }
 0x1b1   :  { %3831 = vmatprep.subr.bf16.mxu1 %v4058_v25 }
 0x1b3   :  { %3810 = vmatpush3.bf16.msra.mxu0 %v4059_v28 }
 0x1b4   :  { %3832 = vmatpush3.bf16.msra.mxu1 %v4060_v23  ;;  %3811 = vmatprep.subr.bf16.mxu0 %v4061_v60 }
 0x1b5   :  { %3833 = vmatprep.subr.bf16.mxu1 %v4062_v32 }
 0x1b7   :  { %3812 = vmatpush3.bf16.msra.mxu0 %v4063_v33  ;;  %v1497_v33 = vld [vmem:[#allocation10 + $0x8] sm:$0xff] }
 0x1b8   :  { %3834 = vmatpush3.bf16.msra.mxu1 %v4064_v34  ;;  %3813 = vmatprep.subr.bf16.mxu0 %v4065_v35 }
 0x1b9   :  { %3835 = vmatprep.subr.bf16.mxu1 %v4066_v38  ;;  %v4517_v38 = vld [vmem:[#allocation10 + $0x3] ss:$0 sm:$0xff] }
 0x1bb   :  { %3814 = vmatpush3.bf16.msra.mxu0 %v4067_v40 }
 0x1bc   :  { %3836 = vmatpush3.bf16.msra.mxu1 %v4068_v26  ;;  %3947 = vmatprep.subr.mxu0 %v4316_v61 }
 0x1bd   :  { %3954 = vmatprep.subr.mxu1 %v4316_v61 }
 0x1be   :  { %1411 = vmatmul.mubr.bf16.vlgmr.msra.gmra.mxu0 %v906_v42 }
 0x1bf   :  { %1451 = vmatmul.mubr.bf16.vlgmr.msra.gmra.mxu1 %v908_v45  ;;  %3951 = vmatprep.mubr.msk.f32.mxu0 %vm4317_vm13, %v4316_v61 }
 0x1c0   :  { %3948 = vmatpush3.msra.mxu0 %v1498_v29  ;;  %3956 = vmatprep.mubr.msk.f32.mxu1 %vm4317_vm13, %v4316_v61 }
 0x1c1   :  { %3949 = vmatprep.subr.mxu0 %v4316_v61 }
 0x1c2   :  { %3950 = vmatpush3.msra.mxu0 %v1497_v33 }
 0x1c3   :  { %3959 = vmatprep.subr.mxu0 %v4316_v61 }
 0x25e   :  { %v3771_v49 = vpop.f32.mrf.mxu0 }
 0x25f   :  { %v3793_v50 = vpop.f32.mrf.mxu1 }
 0x260   :  { %v3772_v51 = vpop.f32.mrf.mxu0 }
 0x261   :  { %v3794_v62 = vpop.f32.mrf.mxu1  ;;  %v3773_v57 = vadd.f32 %v3772_v51, %v3771_v49 }
 0x262   :  { %v3774_v52 = vpop.f32.mrf.mxu0  ;;  %v3795_v4 = vadd.f32 %v3794_v62, %v3793_v50 }
 0x263   :  { %v3796_v63 = vpop.f32.mrf.mxu1  ;;  %v1333_v59 = vadd.f32 %v3773_v57, %v3577_v58 }
 0x264   :  { %v3775_v53 = vpop.f32.mrf.mxu0 }
 0x265   :  { %v3797_v56 = vpop.f32.mrf.mxu1  ;;  %v1373_v54 = vadd.f32 %v3795_v4, %v1333_v59 }
 0x27e   :  { %v3815_v3 = vpop.f32.mrf.mxu0 }
 0x27f   :  { %v3837_v13 = vpop.f32.mrf.mxu1 }
 0x280   :  { %v3816_v5 = vpop.f32.mrf.mxu0 }
 0x281   :  { %v3817_v14 = vadd.f32 %v3816_v5, %v3815_v3  ;;  %v3838_v6 = vpop.f32.mrf.mxu1 }
 0x282   :  { %v3818_v7 = vpop.f32.mrf.mxu0  ;;  %v3839_v9 = vadd.f32 %v3838_v6, %v3837_v13 }
 0x283   :  { %v1413_v8 = vadd.f32 %v3817_v14, %v1373_v54  ;;  %v3840_v10 = vpop.f32.mrf.mxu1 }
 0x284   :  { %v3819_v55 = vpop.f32.mrf.mxu0 }
 0x285   :  { %v1453_v11 = vadd.f32 %v3839_v9, %v1413_v8  ;;  %v3841_v12 = vpop.f32.mrf.mxu1 }
 0x287   :  { %1466 = vrot.lane.b32.xlu0 %v1453_v11, %s4315_s1  ;;  %v1459_v15 = vmul.f32 1.442695, %v1453_v11  ;;  %vm1458_vm11 = vcmp.gt.f32.partialorder %v1453_v11, 0.0 }
 0x289   :  { %4149 = vpow2.f32 %v1459_v15 }
 0x296   :  { %v4150_v16 = vpop.eup %4149 }
 0x297   :  { %v3642_v19 = vadd.f32 -1.0, %v4150_v16 }
 0x299   :  { %v1462_v20 = vmul.f32 1.6732632, %v3642_v19 }
 0x29b   :  { %v1463_v21 = vsel %vm1458_vm11, %v1453_v11, %v1462_v20 }
 0x29c   :  { %v1464_v22 = vmul.f32 1.050701, %v1463_v21 }
 0x2f9   :  { %v1467_v25 = vpop.permute.xlu0 %1466 }
 0x2fa   :  { %v1469_v27 = vadd.f32 %v1467_v25, %v1464_v22 }
 0x2fc   :  { %v1473_v28 = vsel %vm1472_vm12, %v1469_v27, 0.0 }
 0x2fd   :  { %1474 = vadd.xlane.f32.xlu1 %v1473_v28 }
 0x386   :  { %v1475_v23 = vpop.xlane.xlu1 %1474 }
 0x387   :  { %v1477_v60 = vmul.f32 0.0625, %v1475_v23 }
 0x389   :  { %v1478_v31 = vsub.f32 %v1469_v27, %v1477_v60 }
 0x38b   :  { %v1479_v32 = vmul.f32 %v1478_v31, %v1478_v31 }
 0x38d   :  { %v1480_v24 = vsel %vm1472_vm12, %v1479_v32, 0.0 }
 0x38e   :  { %1481 = vadd.xlane.f32.xlu1 %v1480_v24 }
 0x417   :  { %v1482_v30 = vpop.xlane.xlu1 %1481 }
 0x418   :  { %v1483_v34 = vmul.f32 0.0625, %v1482_v30 }
 0x41a   :  { %v1484_v35 = vadd.f32 1e-05, %v1483_v34 }
 0x41c   :  { %4151 = vrsqrt.f32 %v1484_v35 }
 0x429   :  { %v4152_v36 = vpop.eup %4151 }
 0x42a   :  { %v1486_v37 = vmul.f32 %v4152_v36, %v1478_v31 }
 0x42c   :  { %v1491_v40 = vmul.f32 %v4517_v38, %v1486_v37 }
 0x42e   :  { %v1496_v48 = vadd.f32 %v4519_v39, %v1491_v40 }
 0x430   :  { %3952 = vmatmul.mubr.msk.f32.vlgmr.msra.gmra.mxu0 %vm1472_vm12, %v1496_v48 }
 0x431   :  { %3961 = vmatprep.mubr.msk.f32.mxu0 %vm4317_vm13, %v4316_v61 }
 0x4f0   :  { %v1568_v26 = vpop.f32.mrf.mxu0 }
 0x4f1   :  { %1589 = vrot.lane.b32.xlu0 %v1568_v26, %s4315_s1  ;;  %v1572_v49 = vsel %vm1472_vm12, %v1568_v26, 0.0 }
 0x4f2   :  { %v3953_v41 = vpop.f32.mrf.mxu0 }
 0x563   :  { %v1590_v42 = vpop.permute.xlu0 %1589 }
 0x564   :  { %v1592_v45 = vsel %vm1472_vm12, %v1590_v42, 0.0 }
 0x565   :  { %1593 = vadd.xlane.f32.xlu1 %v1592_v45 }
 0x569   :  { %1573 = vadd.xlane.f32.xlu1 %v1572_v49 }
 0x57a   :  { %1610 = vrot.lane.b32.xlu1 %v4517_v38, %s4318_s27 }
 0x57e   :  { %1615 = vrot.lane.b32.xlu1 %v4519_v39, %s4318_s27 }
 0x5ee   :  { %v1594_v50 = vpop.xlane.xlu1 %1593 }
 0x5ef   :  { %v1595_v51 = vmul.f32 0.0625, %v1594_v50 }
 0x5f1   :  { %v1596_v62 = vsub.f32 %v1568_v26, %v1595_v51 }
 0x5f2   :  { %v1574_v52 = vpop.xlane.xlu1 %1573 }
 0x5f3   :  { %v1575_v63 = vmul.f32 0.0625, %v1574_v52  ;;  %v1597_v53 = vmul.f32 %v1596_v62, %v1596_v62 }
 0x5f5   :  { %v1576_v56 = vsub.f32 %v1568_v26, %v1575_v63  ;;  %1599 = vrot.lane.b32.xlu0 %v1597_v53, %s4315_s1 }
 0x5f6   :  { %v1611_v54 = vpop.permute.xlu1 %1610 }
 0x5f7   :  { %v1577_v57 = vmul.f32 %v1576_v56, %v1576_v56 }
 0x5f9   :  { %v1578_v58 = vsel %vm1472_vm12, %v1577_v57, 0.0 }
 0x5fa   :  { %1579 = vadd.xlane.f32.xlu1 %v1578_v58  ;;  %v1616_v8 = vpop.permute.xlu1 %1615 }
 0x667   :  { %v1600_v59 = vpop.permute.xlu0 %1599 }
 0x668   :  { %v1602_v3 = vsel %vm1472_vm12, %v1600_v59, 0.0 }
 0x669   :  { %1603 = vadd.xlane.f32.xlu0 %v1602_v3 }
 0x683   :  { %v1580_v10 = vpop.xlane.xlu1 %1579 }
 0x684   :  { %v1581_v55 = vmul.f32 0.0625, %v1580_v10 }
 0x686   :  { %v1582_v11 = vadd.f32 1e-05, %v1581_v55 }
 0x6f2   :  { %v1604_v4 = vpop.xlane.xlu0 %1603 }
 0x6f3   :  { %v1605_v13 = vmul.f32 0.0625, %v1604_v4 }
 0x6f5   :  { %v1606_v5 = vadd.f32 1e-05, %v1605_v13 }
 0x6f7   :  { %4153 = vrsqrt.f32 %v1606_v5 }
 0x6f8   :  { %4155 = vrsqrt.f32 %v1582_v11 }
 0x704   :  { %v4154_v14 = vpop.eup %4153 }
 0x705   :  { %v1608_v6 = vmul.f32 %v4154_v14, %v1596_v62  ;;  %v4156_v12 = vpop.eup %4155 }
 0x706   :  { %v1584_v15 = vmul.f32 %v4156_v12, %v1576_v56  ;;  %v4567_v12 = vld [vmem:[#allocation10 + $0x5] ss:$0 sm:$0xff] }
 0x707   :  { %v1613_v7 = vmul.f32 %v1611_v54, %v1608_v6 }
 0x708   :  { %v1585_v16 = vmul.f32 %v4517_v38, %v1584_v15 }
 0x709   :  { %v1618_v9 = vadd.f32 %v1616_v8, %v1613_v7  ;;  %v1845_v7 = vld [vmem:[#allocation10 + $0x20] sm:$0xff]  ;;  %v1844_v8 = vld [vmem:[#allocation10 + $0x18] sm:$0xff] }
 0x70a   :  { %v1586_v19 = vadd.f32 %v4519_v39, %v1585_v16  ;;  %v4569_v16 = vld [vmem:[#allocation10 + $0x6] ss:$0 sm:$0xff] }
 0x70b   :  { %1648 = vrot.lane.b32.xlu0 %v1618_v9, %s4315_s1 }
 0x70c   :  { %v1587_v21 = vmul.f32 0.25, %v1586_v19 }
 0x70f   :  { %1619 = vrot.lane.b32.xlu0 %v1568_v26, %s4319_s28 }
 0x77d   :  { %v1649_v20 = vpop.permute.xlu0 %1648 }
 0x77e   :  { %3955 = vmatpush3.xpose.msk.msra.mxu1 %vm1472_vm12, %v1649_v20 }
 0x77f   :  { %3964 = vmatprep.subr.mxu1 %v4316_v61 }
 0x781   :  { %v1620_v22 = vpop.permute.xlu0 %1619  ;;  %3957 = vmatmul.mubr.msk.f32.vlgmr.msra.gmra.mxu1 %vm1472_vm12, %v1587_v21 }
 0x782   :  { %v1622_v25 = vsel %vm1472_vm12, %v1620_v22, 0.0  ;;  %3968 = vmatprep.mubr.msk.f32.mxu1 %vm4317_vm13, %v4316_v61  ;;  %3965 = vmatpush3.msra.mxu1 %v1845_v7 }
 0x783   :  { %1623 = vadd.xlane.f32.xlu0 %v1622_v25  ;;  %3966 = vmatprep.subr.mxu1 %v4316_v61 }
 0x784   :  { %3967 = vmatpush3.msra.mxu1 %v1844_v8 }
 0x785   :  { %3976 = vmatprep.subr.mxu1 %v4316_v61 }
 0x80c   :  { %v1624_v27 = vpop.xlane.xlu0 %1623 }
 0x80d   :  { %v1625_v28 = vmul.f32 0.0625, %v1624_v27 }
 0x80f   :  { %v1626_v23 = vsub.f32 %v1568_v26, %v1625_v28 }
 0x811   :  { %v1627_v60 = vmul.f32 %v1626_v23, %v1626_v23 }
 0x813   :  { %1629 = vrot.lane.b32.xlu1 %v1627_v60, %s4319_s28 }
 0x841   :  { %v1721_v31 = vpop.f32.mrf.mxu1 }
 0x842   :  { %v1726_v32 = vsel %vm1725_vm14, %v1721_v31, -inf }
 0x843   :  { %1727 = vmax.xlane.f32.xlu1 %v1726_v32  ;;  %v3958_v24 = vpop.f32.mrf.mxu1 }
 0x854   :  { %1643 = vrot.lane.b32.xlu1 %v4519_v39, %s4320_s29 }
 0x885   :  { %v1630_v29 = vpop.permute.xlu1 %1629 }
 0x886   :  { %v1632_v33 = vsel %vm1472_vm12, %v1630_v29, 0.0 }
 0x887   :  { %1633 = vadd.xlane.f32.xlu0 %v1632_v33 }
 0x89d   :  { %1639 = vrot.lane.b32.xlu0 %v4517_v38, %s4320_s29 }
 0x8cc   :  { %v1728_v30 = vpop.xlane.xlu1 %1727 }
 0x8cd   :  { %v1729_v34 = vsub.f32 %v1721_v31, %v1728_v30 }
 0x8cf   :  { %v1730_v35 = vmul.f32 1.442695, %v1729_v34 }
 0x8d0   :  { %v1644_v45 = vpop.permute.xlu1 %1643 }
 0x8d1   :  { %4157 = vpow2.f32 %v1730_v35 }
 0x8de   :  { %v4158_v36 = vpop.eup %4157 }
 0x8df   :  { %v1732_v37 = vsel %vm1725_vm14, %v4158_v36, 0.0 }
 0x8e0   :  { %1733 = vadd.xlane.f32.xlu0 %v1732_v37 }
 0x910   :  { %v1634_v40 = vpop.xlane.xlu0 %1633 }
 0x911   :  { %v1635_v48 = vmul.f32 0.0625, %v1634_v40 }
 0x913   :  { %v1636_v26 = vadd.f32 1e-05, %v1635_v48 }
 0x914   :  { %v1640_v41 = vpop.permute.xlu0 %1639 }
 0x915   :  { %4159 = vrsqrt.f32 %v1636_v26 }
 0x922   :  { %v4160_v39 = vpop.eup %4159 }
 0x923   :  { %v1638_v42 = vmul.f32 %v4160_v39, %v1626_v23 }
 0x925   :  { %v1642_v49 = vmul.f32 %v1640_v41, %v1638_v42 }
 0x927   :  { %v1646_v50 = vadd.f32 %v1644_v45, %v1642_v49 }
 0x929   :  { %1738 = vrot.lane.b32.xlu1 %v1646_v50, %s4319_s28 }
 0x969   :  { %v1734_v38 = vpop.xlane.xlu0 %1733 }
 0x96a   :  { %4161 = vrcp.f32 %v1734_v38 }
 0x977   :  { %v4162_v51 = vpop.eup %4161 }
 0x978   :  { %v1736_v52 = vmul.f32 %v4162_v51, %v4158_v36 }
 0x99b   :  { %v1739_v62 = vpop.permute.xlu1 %1738 }
 0x99c   :  { %3960 = vmatpush3.msra.mxu0 %v1739_v62 }
 0x99d   :  { %3962 = vmatmul.mubr.msk.f32.vlgmr.msra.gmra.mxu0 %vm1725_vm14, %v1736_v52  ;;  %3971 = vmatprep.subr.mxu0 %v4316_v61 }
 0x99e   :  { %3973 = vmatprep.mubr.msk.f32.mxu0 %vm4317_vm13, %v4316_v61 }
 0xa5d   :  { %v1810_v63 = vpop.f32.mrf.mxu0 }
 0xa5e   :  { %v1814_v53 = vsub.f32 0.0, %v1810_v63 }
 0xa5f   :  { %v3963_v56 = vpop.f32.mrf.mxu0 }
 0xa60   :  { %v1815_v57 = vmul.f32 1.442695, %v1814_v53 }
 0xa62   :  { %4163 = vpow2.f32 %v1815_v57 }
 0xa6f   :  { %v4164_v58 = vpop.eup %4163 }
 0xa70   :  { %v1817_v59 = vadd.f32 1.0, %v4164_v58 }
 0xa72   :  { %4165 = vrcp.f32 %v1817_v59 }
 0xa7f   :  { %v4166_v3 = vpop.eup %4165 }
 0xa80   :  { %3515 = vst.msk [vmem:[%s4715_s6] sm:$0xff] %vm1472_vm12, %v4166_v3  ;;  %v1821_v4 = vsel %vm1472_vm12, %v4166_v3, 0.0 }
 0xa81   :  { %1822 = vadd.xlane.f32.xlu1 %v1821_v4 }
 0xb0a   :  { %v1823_v13 = vpop.xlane.xlu1 %1822 }
 0xb0b   :  { %v1824_v5 = vmul.f32 0.0625, %v1823_v13 }
 0xb0d   :  { %v1825_v54 = vsub.f32 %v4166_v3, %v1824_v5 }
 0xb0f   :  { %v1826_v14 = vmul.f32 %v1825_v54, %v1825_v54 }
 0xb11   :  { %v1827_v6 = vsel %vm1472_vm12, %v1826_v14, 0.0 }
 0xb12   :  { %1828 = vadd.xlane.f32.xlu0 %v1827_v6 }
 0xb9b   :  { %v1829_v9 = vpop.xlane.xlu0 %1828 }
 0xb9c   :  { %v1830_v10 = vmul.f32 0.0625, %v1829_v9 }
 0xb9e   :  { %v1831_v55 = vadd.f32 1e-05, %v1830_v10 }
 0xba0   :  { %4167 = vrsqrt.f32 %v1831_v55 }
 0xbad   :  { %v4168_v11 = vpop.eup %4167 }
 0xbae   :  { %v1833_v15 = vmul.f32 %v4168_v11, %v1825_v54 }
 0xbb0   :  { %v1838_v19 = vmul.f32 %v4567_v12, %v1833_v15 }
 0xbb2   :  { %v1843_v20 = vadd.f32 %v4569_v16, %v1838_v19 }
 0xbb4   :  { %3969 = vmatmul.mubr.msk.f32.vlgmr.msra.gmra.mxu1 %vm1472_vm12, %v1843_v20 }
 0xbb5   :  { %3978 = vmatprep.mubr.msk.f32.mxu1 %vm4317_vm13, %v4316_v61 }
 0xc74   :  { %v1915_v21 = vpop.f32.mrf.mxu1 }
 0xc75   :  { %1936 = vrot.lane.b32.xlu0 %v1915_v21, %s4315_s1  ;;  %v1919_v28 = vsel %vm1472_vm12, %v1915_v21, 0.0 }
 0xc76   :  { %v3970_v22 = vpop.f32.mrf.mxu1 }
 0xc77   :  { %v2168_v22 = vld [vmem:[#allocation5 + $0x140] sm:$0xff] }
 0xce7   :  { %v1937_v25 = vpop.permute.xlu0 %1936 }
 0xce8   :  { %v1939_v27 = vsel %vm1472_vm12, %v1937_v25, 0.0 }
 0xce9   :  { %1940 = vadd.xlane.f32.xlu1 %v1939_v27 }
 0xced   :  { %1920 = vadd.xlane.f32.xlu1 %v1919_v28 }
 0xcfe   :  { %1957 = vrot.lane.b32.xlu1 %v4567_v12, %s4318_s27 }
 0xd02   :  { %1962 = vrot.lane.b32.xlu1 %v4569_v16, %s4318_s27 }
 0xd72   :  { %v1941_v23 = vpop.xlane.xlu1 %1940 }
 0xd73   :  { %v1942_v60 = vmul.f32 0.0625, %v1941_v23 }
 0xd75   :  { %v1943_v31 = vsub.f32 %v1915_v21, %v1942_v60 }
 0xd76   :  { %v1921_v32 = vpop.xlane.xlu1 %1920 }
 0xd77   :  { %v1922_v24 = vmul.f32 0.0625, %v1921_v32  ;;  %v1944_v29 = vmul.f32 %v1943_v31, %v1943_v31 }
 0xd79   :  { %v1923_v33 = vsub.f32 %v1915_v21, %v1922_v24  ;;  %1946 = vrot.lane.b32.xlu0 %v1944_v29, %s4315_s1  ;;  %v2161_v29 = vld [vmem:[#allocation5 + $0x108] sm:$0xff] }
 0xd7a   :  { %v1958_v26 = vpop.permute.xlu1 %1957 }
 0xd7b   :  { %v1924_v30 = vmul.f32 %v1923_v33, %v1923_v33 }
 0xd7d   :  { %v1925_v34 = vsel %vm1472_vm12, %v1924_v30, 0.0 }
 0xd7e   :  { %1926 = vadd.xlane.f32.xlu1 %v1925_v34  ;;  %v1963_v45 = vpop.permute.xlu1 %1962 }
 0xdeb   :  { %v1947_v35 = vpop.permute.xlu0 %1946 }
 0xdec   :  { %v1949_v36 = vsel %vm1472_vm12, %v1947_v35, 0.0 }
 0xded   :  { %1950 = vadd.xlane.f32.xlu0 %v1949_v36 }
 0xe07   :  { %v1927_v50 = vpop.xlane.xlu1 %1926 }
 0xe08   :  { %v1928_v38 = vmul.f32 0.0625, %v1927_v50  ;;  %v2164_v50 = vld [vmem:[#allocation5 + $0x120] sm:$0xff] }
 0xe0a   :  { %v1929_v51 = vadd.f32 1e-05, %v1928_v38  ;;  %v2172_v38 = vld [vmem:[#allocation5 + $0x160] sm:$0xff] }
 0xe76   :  { %v1951_v37 = vpop.xlane.xlu0 %1950 }
 0xe77   :  { %v1952_v40 = vmul.f32 0.0625, %v1951_v37 }
 0xe79   :  { %v1953_v48 = vadd.f32 1e-05, %v1952_v40  ;;  %v2162_v40 = vld [vmem:[#allocation5 + $0x110] sm:$0xff] }
 0xe7b   :  { %4169 = vrsqrt.f32 %v1953_v48  ;;  %v2170_v48 = vld [vmem:[#allocation5 + $0x150] sm:$0xff] }
 0xe7c   :  { %4171 = vrsqrt.f32 %v1929_v51  ;;  %v2165_v51 = vld [vmem:[#allocation5 + $0x128] sm:$0xff] }
 0xe88   :  { %v4170_v39 = vpop.eup %4169 }
 0xe89   :  { %v1955_v41 = vmul.f32 %v4170_v39, %v1943_v31  ;;  %v4172_v62 = vpop.eup %4171  ;;  %v3659_v39 = vcombine.low %v2162_v40, %v2170_v48 }
 0xe8a   :  { %v1931_v52 = vmul.f32 %v4172_v62, %v1923_v33  ;;  %v2169_v33 = vld [vmem:[#allocation5 + $0x148] sm:$0xff] }
 0xe8b   :  { %v1960_v42 = vmul.f32 %v1958_v26, %v1955_v41  ;;  %v3658_v34 = vcombine.high %v2161_v29, %v2169_v33  ;;  %v3657_v35 = vcombine.low %v2161_v29, %v2169_v33  ;;  %v2163_v26 = vld [vmem:[#allocation5 + $0x118] sm:$0xff]  ;;  %v3660_v41 = vcombine.high %v2162_v40, %v2170_v48  ;;  %v2173_v62 = vld [vmem:[#allocation5 + $0x168] sm:$0xff]  ;;  %v4090_v29 = vld [vmem:[#allocation7 + $0x2d0] sm:$0xff]  }
 0xe8c   :  { %v1932_v63 = vmul.f32 %v4567_v12, %v1931_v52  ;;  %v4091_v33 = vld [vmem:[#allocation7 + $0x210] sm:$0xff]   ;;  %v4097_v40 = vld [vmem:[#allocation7 + $0x240] sm:$0xff]  }
 0xe8d   :  { %v1965_v49 = vadd.f32 %v1963_v45, %v1960_v42  ;;  %v2171_v42 = vld [vmem:[#allocation5 + $0x158] sm:$0xff]  ;;  %v4098_v48 = vld [vmem:[#allocation7 + $0x2c0] sm:$0xff]  }
 0xe8e   :  { %v1933_v53 = vadd.f32 %v4569_v16, %v1932_v63  ;;  %v3661_v45 = vcombine.low %v2163_v26, %v2171_v42 }
 0xe8f   :  { %1995 = vrot.lane.b32.xlu0 %v1965_v49, %s4315_s1  ;;  %v3662_v49 = vcombine.high %v2163_v26, %v2171_v42  ;;  %v4099_v26 = vld [vmem:[#allocation7 + $0x200] sm:$0xff]   ;;  %v4102_v42 = vld [vmem:[#allocation7 + $0x3f8] sm:$0xff]  }
 0xe90   :  { %v1934_v57 = vmul.f32 0.25, %v1933_v53 }
 0xe93   :  { %1966 = vrot.lane.b32.xlu0 %v1915_v21, %s4319_s28 }
 0xf01   :  { %v1996_v56 = vpop.permute.xlu0 %1995 }
 0xf02   :  { %3972 = vmatpush3.xpose.msk.msra.mxu0 %vm1472_vm12, %v1996_v56  ;;  %v3664_v56 = vcombine.high %v2164_v50, %v2172_v38 }
 0xf05   :  { %v1967_v58 = vpop.permute.xlu0 %1966  ;;  %3974 = vmatmul.mubr.msk.f32.vlgmr.msra.gmra.mxu0 %vm1472_vm12, %v1934_v57  ;;  %v3666_v57 = vcombine.high %v2165_v51, %v2173_v62 }
 0xf06   :  { %v1969_v59 = vsel %vm1472_vm12, %v1967_v58, 0.0  ;;  %2378 = vmatprep.mubr.bf16.mxu0 %v4313_v0  ;;  %v2166_v58 = vld [vmem:[#allocation5 + $0x130] sm:$0xff] }
 0xf07   :  { %1970 = vadd.xlane.f32.xlu0 %v1969_v59  ;;  %v2174_v59 = vld [vmem:[#allocation5 + $0x170] sm:$0xff] }
 0xf90   :  { %v1971_v3 = vpop.xlane.xlu0 %1970 }
 0xf91   :  { %v1972_v4 = vmul.f32 0.0625, %v1971_v3  ;;  %v2167_v3 = vld [vmem:[#allocation5 + $0x138] sm:$0xff] }
 0xf93   :  { %v1973_v13 = vsub.f32 %v1915_v21, %v1972_v4  ;;  %v2175_v4 = vld [vmem:[#allocation5 + $0x178] sm:$0xff] }
 0xf95   :  { %v1974_v5 = vmul.f32 %v1973_v13, %v1973_v13 }
 0xf97   :  { %1976 = vrot.lane.b32.xlu1 %v1974_v5, %s4319_s28  ;;  %v3665_v5 = vcombine.low %v2165_v51, %v2173_v62 }
 0xfc5   :  { %v2068_v54 = vpop.f32.mrf.mxu0 }
 0xfc6   :  { %v2072_v14 = vsel %vm1725_vm14, %v2068_v54, -inf }
 0xfc7   :  { %2073 = vmax.xlane.f32.xlu1 %v2072_v14  ;;  %v3975_v6 = vpop.f32.mrf.mxu0  ;;  %v3670_v14 = vcombine.high %v2167_v3, %v2175_v4 }
 0xfc8   :  { %v3667_v6 = vcombine.low %v2166_v58, %v2174_v59 }
 0xfd8   :  { %1990 = vrot.lane.b32.xlu1 %v4569_v16, %s4320_s29  ;;  %v2160_v16 = vld [vmem:[#allocation5 + $0x100] sm:$0xff] }
 0xfd9   :  { %v3655_v25 = vcombine.low %v2160_v16, %v2168_v22  ;;  %v3656_v27 = vcombine.high %v2160_v16, %v2168_v22  ;;  %v4079_v16 = vld [vmem:[#allocation7 + $0x228] sm:$0xff]  }
 0xfda   :  { %v4080_v22 = vld [vmem:[#allocation7 + $0x2a8] sm:$0xff]  }
 0xfdb   :  { %2360 = vmatprep.subr.bf16.mxu0 %v3656_v27  ;;  %v4082_v27 = vld [vmem:[#allocation7 + $0x2e0] sm:$0xff]  }
 0xfdc   :  { %2361 = vmatpush1.bf16.msra.mxu0 %v3655_v25  ;;  %v4081_v25 = vld [vmem:[#allocation7 + $0x260] sm:$0xff]  }
 0xfdd   :  { %2442 = vmatprep.subr.bf16.mxu0 %v3660_v41  ;;  %v4101_v41 = vld [vmem:[#allocation7 + $0x378] sm:$0xff]  }
0x1009   :  { %v1977_v7 = vpop.permute.xlu1 %1976 }
0x100a   :  { %v1979_v8 = vsel %vm1472_vm12, %v1977_v7, 0.0  ;;  %v3669_v7 = vcombine.low %v2167_v3, %v2175_v4 }
0x100b   :  { %1980 = vadd.xlane.f32.xlu0 %v1979_v8  ;;  %v4069_v8 = vld [vmem:[#allocation7 + $0x278] sm:$0xff]  }
0x1021   :  { %1986 = vrot.lane.b32.xlu0 %v4567_v12, %s4320_s29 }
0x1050   :  { %v2074_v9 = vpop.xlane.xlu1 %2073 }
0x1051   :  { %v2075_v10 = vsub.f32 %v2068_v54, %v2074_v9  ;;  %v3668_v54 = vcombine.high %v2166_v58, %v2174_v59  ;;  %v4070_v9 = vld [vmem:[#allocation7 + $0x2f8] sm:$0xff]  }
0x1053   :  { %v2076_v55 = vmul.f32 1.442695, %v2075_v10  ;;  %v4071_v10 = vld [vmem:[#allocation7 + $0x238] sm:$0xff]  }
0x1054   :  { %v1991_v60 = vpop.permute.xlu1 %1990 }
0x1055   :  { %4173 = vpow2.f32 %v2076_v55  ;;  %v4072_v55 = vld [vmem:[#allocation7 + $0x2b8] sm:$0xff]  }
0x1062   :  { %v4174_v11 = vpop.eup %4173 }
0x1063   :  { %v2078_v15 = vsel %vm1725_vm14, %v4174_v11, 0.0 }
0x1064   :  { %2079 = vadd.xlane.f32.xlu0 %v2078_v15  ;;  %v4074_v15 = vld [vmem:[#allocation7 + $0x2f0] sm:$0xff]  }
0x1094   :  { %v1981_v19 = vpop.xlane.xlu0 %1980 }
0x1095   :  { %v1982_v20 = vmul.f32 0.0625, %v1981_v19  ;;  %v4075_v19 = vld [vmem:[#allocation7 + $0x230] sm:$0xff]  }
0x1097   :  { %v1983_v21 = vadd.f32 1e-05, %v1982_v20  ;;  %v4076_v20 = vld [vmem:[#allocation7 + $0x2b0] sm:$0xff]  }
0x1098   :  { %v1987_v12 = vpop.permute.xlu0 %1986 }
0x1099   :  { %4175 = vrsqrt.f32 %v1983_v21  ;;  %v4078_v21 = vld [vmem:[#allocation7 + $0x2e8] sm:$0xff]  }
0x10a6   :  { %v4176_v28 = vpop.eup %4175 }
0x10a7   :  { %v1985_v23 = vmul.f32 %v4176_v28, %v1973_v13  ;;  %v3663_v13 = vcombine.low %v2164_v50, %v2172_v38  ;;  %v4083_v28 = vld [vmem:[#allocation7 + $0x220] sm:$0xff]  }
0x10a9   :  { %v1989_v31 = vmul.f32 %v1987_v12, %v1985_v23  ;;  %v4084_v12 = vld [vmem:[#allocation7 + $0x2a0] sm:$0xff]   ;;  %v4085_v23 = vld [vmem:[#allocation7 + $0x258] sm:$0xff]  }
0x10ab   :  { %v1993_v32 = vadd.f32 %v1991_v60, %v1989_v31  ;;  %v4086_v60 = vld [vmem:[#allocation7 + $0x2d8] sm:$0xff]  }
0x10ac   :  { %v4087_v31 = vld [vmem:[#allocation7 + $0x218] sm:$0xff]  }
0x10ad   :  { %2084 = vrot.lane.b32.xlu1 %v1993_v32, %s4319_s28  ;;  %v4088_v32 = vld [vmem:[#allocation7 + $0x298] sm:$0xff]  }
0x10ed   :  { %v2080_v24 = vpop.xlane.xlu0 %2079 }
0x10ee   :  { %4177 = vrcp.f32 %v2080_v24  ;;  %v4089_v24 = vld [vmem:[#allocation7 + $0x250] sm:$0xff]  }
0x10fb   :  { %v4178_v30 = vpop.eup %4177 }
0x10fc   :  { %v2082_v37 = vmul.f32 %v4178_v30, %v4174_v11  ;;  %v4073_v11 = vld [vmem:[#allocation7 + $0x270] sm:$0xff]  }
0x10fd   :  { %v4092_v30 = vld [vmem:[#allocation7 + $0x290] sm:$0xff]  }
0x111f   :  { %v2085_v36 = vpop.permute.xlu1 %2084 }
0x1120   :  { %3977 = vmatpush3.msra.mxu1 %v2085_v36  ;;  %v4095_v36 = vld [vmem:[#allocation7 + $0x208] sm:$0xff]  }
0x1121   :  { %3979 = vmatmul.mubr.msk.f32.vlgmr.msra.gmra.mxu1 %vm1725_vm14, %v2082_v37  ;;  %2401 = vmatprep.subr.bf16.mxu1 %v3658_v34  ;;  %v4093_v34 = vld [vmem:[#allocation7 + $0x248] sm:$0xff]  }
0x1122   :  { %2402 = vmatpush1.bf16.msra.mxu1 %v3657_v35  ;;  %2419 = vmatprep.mubr.bf16.mxu1 %v4313_v0  ;;  %v4094_v35 = vld [vmem:[#allocation7 + $0x2c8] sm:$0xff]  }
0x1123   :  { %2483 = vmatprep.subr.bf16.mxu1 %v3662_v49  ;;  %v4096_v37 = vld [vmem:[#allocation7 + $0x288] sm:$0xff]  }
0x11e1   :  { %v2156_v52 = vpop.f32.mrf.mxu1 }
0x11e2   :  { %v2180_v63 = vpack.c.bf16 %v2156_v52, %v2156_v52 }
0x11e3   :  { %v3980_v53 = vpop.f32.mrf.mxu1 }
0x11e4   :  { %3671 = vmatmul.mubr.msk.bf16.vlgmr.msra.gmra.mxu0 %vm1472_vm12, %v2180_v63  ;;  %3672 = vmatmul.mubr.msk.bf16.vlgmr.msra.gmra.mxu1 %vm1472_vm12, %v2180_v63 }
0x11e5   :  { %2443 = vmatpush1.bf16.msra.mxu0 %v3659_v39  ;;  %2484 = vmatpush1.bf16.msra.mxu1 %v3661_v45  ;;  %v4100_v39 = vld [vmem:[#allocation7 + $0x280] sm:$0xff]  }
0x11e6   :  { %2460 = vmatprep.mubr.bf16.mxu0 %v4313_v0  ;;  %2501 = vmatprep.mubr.bf16.mxu1 %v4313_v0  ;;  %v4619_v45 = vld [vmem:[#allocation8 + $0x1] ss:$2 sm:$0xff] }
0x11e7   :  { %2524 = vmatprep.subr.bf16.mxu0 %v3664_v56  ;;  %2565 = vmatprep.subr.bf16.mxu1 %v3666_v57  ;;  %v2186_v49 = vrot.slane %v4619_v45, %v4404_v43  ;;  %v2194_v50 = vrot.slane %v4619_v45, %v4406_v44  ;;  %v2190_v62 = vrot.slane %v4619_v45, %v4410_v46 }
0x11e8   :  { %v2198_v52 = vrot.slane %v4619_v45, %v4412_v47 }
0x11ec   :  { %3673 = vmatmul.mubr.msk.bf16.vlgmr.msra.gmra.mxu0 %vm1472_vm12, %v2180_v63  ;;  %3674 = vmatmul.mubr.msk.bf16.vlgmr.msra.gmra.mxu1 %vm1472_vm12, %v2180_v63 }
0x11ed   :  { %2525 = vmatpush1.bf16.msra.mxu0 %v3663_v13  ;;  %2566 = vmatpush1.bf16.msra.mxu1 %v3665_v5 }
0x11ee   :  { %2542 = vmatprep.mubr.bf16.mxu0 %v4313_v0  ;;  %2583 = vmatprep.mubr.bf16.mxu1 %v4313_v0 }
0x11ef   :  { %2606 = vmatprep.subr.bf16.mxu0 %v3668_v54  ;;  %2647 = vmatprep.subr.bf16.mxu1 %v3670_v14 }
0x11f4   :  { %3675 = vmatmul.mubr.msk.bf16.vlgmr.msra.gmra.mxu0 %vm1472_vm12, %v2180_v63  ;;  %3676 = vmatmul.mubr.msk.bf16.vlgmr.msra.gmra.mxu1 %vm1472_vm12, %v2180_v63 }
0x11f5   :  { %2607 = vmatpush1.bf16.msra.mxu0 %v3667_v6  ;;  %2648 = vmatpush1.bf16.msra.mxu1 %v3669_v7 }
0x11f6   :  { %2624 = vmatprep.mubr.bf16.mxu0 %v4313_v0  ;;  %2665 = vmatprep.mubr.bf16.mxu1 %v4313_v0  ;;  %v4077_v0 = vld [vmem:[#allocation7 + $0x268] sm:$0xff]  }
0x11f7   :  { %3857 = vmatprep.subr.bf16.mxu0 %v4069_v8  ;;  %3879 = vmatprep.subr.bf16.mxu1 %v4070_v9 }
0x11fc   :  { %3677 = vmatmul.mubr.msk.bf16.vlgmr.msra.gmra.mxu0 %vm1472_vm12, %v2180_v63  ;;  %3678 = vmatmul.mubr.msk.bf16.vlgmr.msra.gmra.mxu1 %vm1472_vm12, %v2180_v63 }
0x11fd   :  { %3858 = vmatpush3.bf16.msra.mxu0 %v4071_v10  ;;  %3880 = vmatpush3.bf16.msra.mxu1 %v4072_v55  ;;  %v2206_v10 = vrot.slane %v4619_v45, %v4432_v1  ;;  %v2214_v55 = vrot.slane %v4619_v45, %v4434_v2 }
0x11fe   :  { %3859 = vmatprep.subr.bf16.mxu0 %v4073_v11  ;;  %3881 = vmatprep.subr.bf16.mxu1 %v4074_v15 }
0x1201   :  { %3860 = vmatpush3.bf16.msra.mxu0 %v4075_v19  ;;  %3882 = vmatpush3.bf16.msra.mxu1 %v4076_v20 }
0x1202   :  { %3861 = vmatprep.subr.bf16.mxu0 %v4077_v0  ;;  %3883 = vmatprep.subr.bf16.mxu1 %v4078_v21 }
0x1205   :  { %3862 = vmatpush3.bf16.msra.mxu0 %v4079_v16  ;;  %3884 = vmatpush3.bf16.msra.mxu1 %v4080_v22 }
0x1206   :  { %3863 = vmatprep.subr.bf16.mxu0 %v4081_v25  ;;  %3885 = vmatprep.subr.bf16.mxu1 %v4082_v27 }
0x1209   :  { %3864 = vmatpush3.bf16.msra.mxu0 %v4083_v28  ;;  %3886 = vmatpush3.bf16.msra.mxu1 %v4084_v12 }
0x120a   :  { %3865 = vmatprep.subr.bf16.mxu0 %v4085_v23  ;;  %3887 = vmatprep.subr.bf16.mxu1 %v4086_v60  ;;  %v2202_v23 = vrot.slane %v4619_v45, %v4446_v17  ;;  %v4653_v60 = vld [vmem:[#allocation8 + $0x11] ss:$2 sm:$0xff] }
0x120d   :  { %3866 = vmatpush3.bf16.msra.mxu0 %v4087_v31  ;;  %3888 = vmatpush3.bf16.msra.mxu1 %v4088_v32  ;;  %v2210_v32 = vrot.slane %v4619_v45, %v4448_v18 }
0x120e   :  { %3867 = vmatprep.subr.bf16.mxu0 %v4089_v24  ;;  %3889 = vmatprep.subr.bf16.mxu1 %v4090_v29 }
0x1211   :  { %3868 = vmatpush3.bf16.msra.mxu0 %v4091_v33  ;;  %3890 = vmatpush3.bf16.msra.mxu1 %v4092_v30 }
0x1212   :  { %3869 = vmatprep.subr.bf16.mxu0 %v4093_v34  ;;  %3891 = vmatprep.subr.bf16.mxu1 %v4094_v35  ;;  %v2218_v35 = vrot.slane %v4653_v60, %v4404_v43 }
0x1215   :  { %3870 = vmatpush3.bf16.msra.mxu0 %v4095_v36  ;;  %3892 = vmatpush3.bf16.msra.mxu1 %v4096_v37 }
0x1216   :  { %3871 = vmatprep.subr.bf16.mxu0 %v4097_v40  ;;  %3893 = vmatprep.subr.bf16.mxu1 %v4098_v48 }
0x1219   :  { %3872 = vmatpush3.bf16.msra.mxu0 %v4099_v26  ;;  %3894 = vmatpush3.bf16.msra.mxu1 %v4100_v39  ;;  %v2226_v39 = vrot.slane %v4653_v60, %v4406_v44  ;;  %v2230_v44 = vrot.slane %v4653_v60, %v4412_v47 }
0x121a   :  { %3901 = vmatprep.subr.bf16.mxu0 %v4101_v41  ;;  %3923 = vmatprep.subr.bf16.mxu1 %v4102_v42  ;;  %v2222_v41 = vrot.slane %v4653_v60, %v4410_v46 }
0x12a4   :  { %v2380_v38 = vpop.f32.mrf.mxu0  ;;  %v2421_v51 = vpop.f32.mrf.mxu1 }
0x12a5   :  { %v4629_v63 = vadd.f32 %v2380_v38, %v2186_v49  ;;  %v4631_v53 = vadd.f32 %v2421_v51, %v2194_v50 }
0x12a6   :  { %v2382_v56 = vpop.f32.mrf.mxu0  ;;  %v2423_v57 = vpop.f32.mrf.mxu1 }
0x12a7   :  { %v2682_v58 = vmul.f32 1.442695, %v4629_v63  ;;  %v2686_v59 = vmul.f32 1.442695, %v4631_v53  ;;  %v4635_v3 = vadd.f32 %v2382_v56, %v2190_v62  ;;  %v4637_v4 = vadd.f32 %v2423_v57, %v2198_v52 }
0x12a8   :  { %v2384_v13 = vpop.f32.mrf.mxu0  ;;  %v2425_v5 = vpop.f32.mrf.mxu1  ;;  %vm2674_vm15 = vcmp.gt.f32.partialorder %v4629_v63, 0.0  ;;  %vm2676_vm0 = vcmp.gt.f32.partialorder %v4631_v53, 0.0 }
0x12a9   :  { %4179 = vpow2.f32 %v2682_v58  ;;  %v2684_v54 = vmul.f32 1.442695, %v4635_v3  ;;  %v2688_v7 = vmul.f32 1.442695, %v4637_v4  ;;  %vm2675_vm1 = vcmp.gt.f32.partialorder %v4635_v3, 0.0 }
0x12aa   :  { %4181 = vpow2.f32 %v2686_v59  ;;  %v2385_v14 = vpop.f32.mrf.mxu0  ;;  %v2426_v6 = vpop.f32.mrf.mxu1  ;;  %vm2677_vm2 = vcmp.gt.f32.partialorder %v4637_v4, 0.0 }
0x12ab   :  { %4183 = vpow2.f32 %v2684_v54 }
0x12ac   :  { %v2462_v8 = vpop.f32.mrf.mxu0  ;;  %v2503_v9 = vpop.f32.mrf.mxu1  ;;  %4185 = vpow2.f32 %v2688_v7 }
0x12ad   :  { %v4659_v48 = vadd.f32 %v2462_v8, %v2202_v23  ;;  %v4666_v49 = vadd.f32 %v2503_v9, %v2210_v32  ;;  %v4103_v32 = vld [vmem:[#allocation7 + $0x338] sm:$0xff]  }
0x12ae   :  { %v2464_v11 = vpop.f32.mrf.mxu0  ;;  %v2505_v15 = vpop.f32.mrf.mxu1 }
0x12af   :  { %v4645_v19 = vadd.f32 %v2464_v11, %v2206_v10  ;;  %v4647_v20 = vadd.f32 %v2505_v15, %v2214_v55  ;;  %v2690_v59 = vmul.f32 1.442695, %v4659_v48  ;;  %vm2678_vm5 = vcmp.gt.f32.partialorder %v4659_v48, 0.0 }
0x12b0   :  { %v2466_v0 = vpop.f32.mrf.mxu0  ;;  %v2507_v21 = vpop.f32.mrf.mxu1  ;;  %vm2680_vm6 = vcmp.gt.f32.partialorder %v4666_v49, 0.0 }
0x12b1   :  { %v2692_v16 = vmul.f32 1.442695, %v4645_v19  ;;  %v2696_v27 = vmul.f32 1.442695, %v4647_v20  ;;  %vm2679_vm3 = vcmp.gt.f32.partialorder %v4645_v19, 0.0  ;;  %vm2681_vm4 = vcmp.gt.f32.partialorder %v4647_v20, 0.0 }
0x12b2   :  { %v2467_v22 = vpop.f32.mrf.mxu0  ;;  %v2508_v25 = vpop.f32.mrf.mxu1 }
0x12b3   :  { %4187 = vpow2.f32 %v2692_v16 }
0x12b4   :  { %v2544_v28 = vpop.f32.mrf.mxu0  ;;  %v2585_v12 = vpop.f32.mrf.mxu1  ;;  %4189 = vpow2.f32 %v2696_v27 }
0x12b5   :  { %v2545_v54 = vadd.f32 %v2544_v28, %v2218_v35  ;;  %v2586_v7 = vadd.f32 %v2585_v12, %v2226_v39  ;;  %4191 = vpow2.f32 %v2690_v59  ;;  %v4105_v35 = vld [vmem:[#allocation7 + $0x370] sm:$0xff]  }
0x12b6   :  { %v4180_v31 = vpop.eup %4179  ;;  %v2546_v24 = vpop.f32.mrf.mxu0 }
0x12b7   :  { %v2587_v29 = vpop.f32.mrf.mxu1  ;;  %v4182_v33 = vpop.eup %4181  ;;  %v3679_v30 = vadd.f32 -1.0, %v4180_v31 }
0x12b8   :  { %v3681_v34 = vadd.f32 -1.0, %v4182_v33  ;;  %v2548_v36 = vpop.f32.mrf.mxu0  ;;  %v4184_v40 = vpop.eup %4183  ;;  %v2588_v55 = vadd.f32 %v2587_v29, %v2230_v44  ;;  %v4111_v44 = vld [vmem:[#allocation7 + $0x328] sm:$0xff]  }
0x12b9   :  { %v2589_v37 = vpop.f32.mrf.mxu1  ;;  %v2706_v26 = vmul.f32 1.6732632, %v3679_v30  ;;  %v4186_v42 = vpop.eup %4185  ;;  %v3680_v45 = vadd.f32 -1.0, %v4184_v40  ;;  %v2246_v30 = vrot.slane %v4653_v60, %v4434_v2  ;;  %v4106_v40 = vld [vmem:[#allocation7 + $0x3f0] sm:$0xff]  }
0x12ba   :  { %v2708_v50 = vmul.f32 1.6732632, %v3681_v34  ;;  %v2549_v43 = vpop.f32.mrf.mxu0  ;;  %v3682_v51 = vadd.f32 -1.0, %v4186_v42  ;;  %v4104_v34 = vld [vmem:[#allocation7 + $0x3b8] sm:$0xff]   ;;  %v4107_v2 = vld [vmem:[#allocation7 + $0x330] sm:$0xff]  }
0x12bb   :  { %v2590_v38 = vpop.f32.mrf.mxu1  ;;  %v2714_v62 = vsel %vm2674_vm15, %v4629_v63, %v2706_v26  ;;  %v2707_v56 = vmul.f32 1.6732632, %v3680_v45  ;;  %v2694_v63 = vmul.f32 1.442695, %v4666_v49  ;;  %v4109_v43 = vld [vmem:[#allocation7 + $0x368] sm:$0xff]  }
0x12bc   :  { %v2722_v46 = vmul.f32 1.050701, %v2714_v62  ;;  %v2716_v52 = vsel %vm2676_vm0, %v4631_v53, %v2708_v50  ;;  %v4674_v57 = vpop.f32.mrf.mxu0  ;;  %v2709_v5 = vmul.f32 1.6732632, %v3682_v51  ;;  %v2547_v53 = vadd.f32 %v2546_v24, %v2222_v41  ;;  %v4108_v50 = vld [vmem:[#allocation7 + $0x3b0] sm:$0xff]   ;;  %v4110_v51 = vld [vmem:[#allocation7 + $0x3e8] sm:$0xff]  }
0x12bd   :  { %v4676_v58 = vpop.f32.mrf.mxu1  ;;  %v2724_v13 = vmul.f32 1.050701, %v2716_v52  ;;  %v2715_v47 = vsel %vm2675_vm1, %v4635_v3, %v2707_v56  ;;  %4193 = vpow2.f32 %v2694_v63  ;;  %v4113_v52 = vld [vmem:[#allocation7 + $0x360] sm:$0xff]  }
0x12be   :  { %v2628_v14 = vpop.f32.mrf.mxu0  ;;  %v2723_v8 = vmul.f32 1.050701, %v2715_v47  ;;  %v2717_v9 = vsel %vm2677_vm2, %v4637_v4, %v2709_v5  ;;  %v2730_v10 = vadd.f32 %v2722_v46, %v2545_v54  ;;  %v2238_v4 = vrot.slane %v4653_v60, %v4432_v1  ;;  %v4114_v56 = vld [vmem:[#allocation7 + $0x3e0] sm:$0xff]   ;;  %v4117_v54 = vld [vmem:[#allocation7 + $0x358] sm:$0xff]  }
0x12bf   :  { %v2669_v6 = vpop.f32.mrf.mxu1  ;;  %v2725_v11 = vmul.f32 1.050701, %v2717_v9  ;;  %v2732_v16 = vadd.f32 %v2724_v13, %v2586_v7  ;;  %v4115_v5 = vld [vmem:[#allocation7 + $0x320] sm:$0xff]   ;;  %v4119_v7 = vld [vmem:[#allocation7 + $0x318] sm:$0xff]  }
0x12c0   :  { %v2630_v15 = vpop.f32.mrf.mxu0  ;;  %v4188_v21 = vpop.eup %4187  ;;  %v2731_v22 = vadd.f32 %v2723_v8, %v2547_v53  ;;  %v2867_v24 = vpack.c.bf16 %v2730_v10, %v2730_v10  ;;  %v2629_v1 = vadd.f32 %v2628_v14, %v2238_v4  ;;  %v2670_v42 = vadd.f32 %v2669_v6, %v2246_v30  ;;  %v4116_v63 = vld [vmem:[#allocation7 + $0x3a0] sm:$0xff]   ;;  %v4118_v14 = vld [vmem:[#allocation7 + $0x3d8] sm:$0xff]   ;;  %v4121_v8 = vld [vmem:[#allocation7 + $0x350] sm:$0xff]  }
0x12c1   :  { %v2671_v0 = vpop.f32.mrf.mxu1  ;;  %v4190_v25 = vpop.eup %4189  ;;  %v3684_v27 = vadd.f32 -1.0, %v4188_v21  ;;  %v2733_v3 = vadd.f32 %v2725_v11, %v2588_v55  ;;  %v2869_v36 = vpack.c.bf16 %v2732_v16, %v2732_v16  ;;  %v4120_v53 = vld [vmem:[#allocation7 + $0x398] sm:$0xff]   ;;  %v4122_v10 = vld [vmem:[#allocation7 + $0x3d0] sm:$0xff]   ;;  %v4126_v16 = vld [vmem:[#allocation7 + $0x3c8] sm:$0xff]  }
0x12c2   :  { %v2631_v28 = vpop.f32.mrf.mxu0  ;;  %v3686_v12 = vadd.f32 -1.0, %v4190_v25  ;;  %v2868_v31 = vpack.c.bf16 %v2731_v22, %v2731_v22  ;;  %v4192_v59 = vpop.eup %4191  ;;  %v4123_v11 = vld [vmem:[#allocation7 + $0x310] sm:$0xff]   ;;  %v4125_v0 = vld [vmem:[#allocation7 + $0x348] sm:$0xff]   ;;  %v2234_v22 = vrot.slane %v4653_v60, %v4446_v17  ;;  %v4131_v17 = vld [vmem:[#allocation7 + $0x300] sm:$0xff]  }
0x12c3   :  { %v2672_v23 = vpop.f32.mrf.mxu1  ;;  %v2870_v29 = vpack.c.bf16 %v2733_v3, %v2733_v3  ;;  %v2711_v33 = vmul.f32 1.6732632, %v3684_v27  ;;  %v3683_v47 = vadd.f32 -1.0, %v4192_v59  ;;  %v4124_v15 = vld [vmem:[#allocation7 + $0x390] sm:$0xff]   ;;  %v2242_v27 = vrot.slane %v4653_v60, %v4448_v18  ;;  %v4127_v3 = vld [vmem:[#allocation7 + $0x308] sm:$0xff]   ;;  %v4132_v18 = vld [vmem:[#allocation7 + $0x380] sm:$0xff]  }
0x12c4   :  { %v2713_v37 = vmul.f32 1.6732632, %v3686_v12  ;;  %3295 = vmatprep.mubr.bf16.mxu0 %v2868_v31  ;;  %v4128_v23 = vld [vmem:[#allocation7 + $0x388] sm:$0xff]   ;;  %v4129_v12 = vld [vmem:[#allocation7 + $0x340] sm:$0xff]   ;;  %v2627_v4 = vadd.f32 %v4674_v57, %v2234_v22 }
0x12c5   :  { %v2719_v26 = vsel %vm2679_vm3, %v4645_v19, %v2711_v33  ;;  %3335 = vmatprep.mubr.bf16.mxu1 %v2870_v29  ;;  %3296 = vmatmul.mubr.bf16.vlgmr.msra.gmra.mxu0 %v2867_v24  ;;  %v2710_v9 = vmul.f32 1.6732632, %v3683_v47  ;;  %v3435_v57 = vld [vmem:[#allocation10 + $0x28] sm:$0xff] }
0x12c6   :  { %v2727_v39 = vmul.f32 1.050701, %v2719_v26  ;;  %v2721_v41 = vsel %vm2681_vm4, %v4647_v20, %v2713_v37  ;;  %3336 = vmatmul.mubr.bf16.vlgmr.msra.gmra.mxu1 %v2869_v36  ;;  %3902 = vmatpush3.bf16.msra.mxu0 %v4103_v32  ;;  %v4112_v20 = vld [vmem:[#allocation7 + $0x3a8] sm:$0xff]   ;;  %v2668_v32 = vadd.f32 %v4676_v58, %v2242_v27 }
0x12c7   :  { %v2729_v45 = vmul.f32 1.050701, %v2721_v41  ;;  %3924 = vmatpush3.bf16.msra.mxu1 %v4104_v34  ;;  %3903 = vmatprep.subr.bf16.mxu0 %v4105_v35  ;;  %v2718_v21 = vsel %vm2678_vm5, %v4659_v48, %v2710_v9  ;;  %v4130_v48 = vld [vmem:[#allocation7 + $0x3c0] sm:$0xff]  }
0x12c8   :  { %v2735_v38 = vadd.f32 %v2727_v39, %v2629_v1  ;;  %3925 = vmatprep.subr.bf16.mxu1 %v4106_v40  ;;  %v2726_v28 = vmul.f32 1.050701, %v2718_v21  ;;  %v3687_v1 = vld [vmem:[#allocation10 + $0x1] ss:$0 sm:$0xff] }
0x12c9   :  { %v2737_v62 = vadd.f32 %v2729_v45, %v2670_v42 }
0x12ca   :  { %v2872_v19 = vpack.c.bf16 %v2735_v38, %v2735_v38  ;;  %3904 = vmatpush3.bf16.msra.mxu0 %v4107_v2  ;;  %v4194_v13 = vpop.eup %4193 }
0x12cb   :  { %v2874_v46 = vpack.c.bf16 %v2737_v62, %v2737_v62  ;;  %3926 = vmatpush3.bf16.msra.mxu1 %v4108_v50  ;;  %3905 = vmatprep.subr.bf16.mxu0 %v4109_v43  ;;  %v3685_v6 = vadd.f32 -1.0, %v4194_v13 }
0x12cc   :  { %3375 = vmatprep.mubr.bf16.mxu0 %v2872_v19  ;;  %3927 = vmatprep.subr.bf16.mxu1 %v4110_v51 }
0x12cd   :  { %3415 = vmatprep.mubr.bf16.mxu1 %v2874_v46  ;;  %v2712_v55 = vmul.f32 1.6732632, %v3685_v6 }
0x12ce   :  { %3906 = vmatpush3.bf16.msra.mxu0 %v4111_v44 }
0x12cf   :  { %3928 = vmatpush3.bf16.msra.mxu1 %v4112_v20  ;;  %3907 = vmatprep.subr.bf16.mxu0 %v4113_v52  ;;  %v2720_v25 = vsel %vm2680_vm6, %v4666_v49, %v2712_v55  ;;  %v2734_v49 = vadd.f32 %v2726_v28, %v2627_v4 }
0x12d0   :  { %3929 = vmatprep.subr.bf16.mxu1 %v4114_v56  ;;  %v2728_v31 = vmul.f32 1.050701, %v2720_v25 }
0x12d1   :  { %v2871_v24 = vpack.c.bf16 %v2734_v49, %v2734_v49 }
0x12d2   :  { %3908 = vmatpush3.bf16.msra.mxu0 %v4115_v5  ;;  %v2736_v60 = vadd.f32 %v2728_v31, %v2668_v32 }
0x12d3   :  { %3930 = vmatpush3.bf16.msra.mxu1 %v4116_v63  ;;  %3909 = vmatprep.subr.bf16.mxu0 %v4117_v54 }
0x12d4   :  { %3931 = vmatprep.subr.bf16.mxu1 %v4118_v14  ;;  %v2873_v29 = vpack.c.bf16 %v2736_v60, %v2736_v60  ;;  %v3753_v14 = vld [vmem:[#allocation10 + $0x2] ss:$0 sm:$0xff] }
0x12d6   :  { %3910 = vmatpush3.bf16.msra.mxu0 %v4119_v7 }
0x12d7   :  { %3932 = vmatpush3.bf16.msra.mxu1 %v4120_v53  ;;  %3911 = vmatprep.subr.bf16.mxu0 %v4121_v8 }
0x12d8   :  { %3933 = vmatprep.subr.bf16.mxu1 %v4122_v10 }
0x12da   :  { %3912 = vmatpush3.bf16.msra.mxu0 %v4123_v11 }
0x12db   :  { %3934 = vmatpush3.bf16.msra.mxu1 %v4124_v15  ;;  %3913 = vmatprep.subr.bf16.mxu0 %v4125_v0 }
0x12dc   :  { %3935 = vmatprep.subr.bf16.mxu1 %v4126_v16 }
0x12de   :  { %3914 = vmatpush3.bf16.msra.mxu0 %v4127_v3 }
0x12df   :  { %3936 = vmatpush3.bf16.msra.mxu1 %v4128_v23  ;;  %3915 = vmatprep.subr.bf16.mxu0 %v4129_v12 }
0x12e0   :  { %3937 = vmatprep.subr.bf16.mxu1 %v4130_v48 }
0x12e2   :  { %3916 = vmatpush3.bf16.msra.mxu0 %v4131_v17 }
0x12e3   :  { %3938 = vmatpush3.bf16.msra.mxu1 %v4132_v18  ;;  %3981 = vmatprep.subr.mxu0 %v4316_v61 }
0x12e5   :  { %3376 = vmatmul.mubr.bf16.vlgmr.msra.gmra.mxu0 %v2871_v24 }
0x12e6   :  { %3416 = vmatmul.mubr.bf16.vlgmr.msra.gmra.mxu1 %v2873_v29  ;;  %3983 = vmatprep.mubr.msk.f32.mxu0 %vm4317_vm13, %v4316_v61 }
0x12e7   :  { %3982 = vmatpush3.msra.mxu0 %v3435_v57 }
0x1385   :  { %v3873_v58 = vpop.f32.mrf.mxu0 }
0x1386   :  { %v3895_v33 = vpop.f32.mrf.mxu1 }
0x1387   :  { %v3874_v30 = vpop.f32.mrf.mxu0 }
0x1388   :  { %v3896_v34 = vpop.f32.mrf.mxu1  ;;  %v3875_v26 = vadd.f32 %v3874_v30, %v3873_v58 }
0x1389   :  { %v3876_v35 = vpop.f32.mrf.mxu0  ;;  %v3897_v2 = vadd.f32 %v3896_v34, %v3895_v33 }
0x138a   :  { %v3898_v36 = vpop.f32.mrf.mxu1  ;;  %v3298_v39 = vadd.f32 %v3875_v26, %v3687_v1 }
0x138b   :  { %v3877_v37 = vpop.f32.mrf.mxu0 }
0x138c   :  { %v3899_v40 = vpop.f32.mrf.mxu1  ;;  %v3338_v50 = vadd.f32 %v3897_v2, %v3298_v39 }
0x13a5   :  { %v3917_v41 = vpop.f32.mrf.mxu0 }
0x13a6   :  { %v3939_v42 = vpop.f32.mrf.mxu1 }
0x13a7   :  { %v3918_v45 = vpop.f32.mrf.mxu0 }
0x13a8   :  { %v3919_v43 = vadd.f32 %v3918_v45, %v3917_v41  ;;  %v3940_v61 = vpop.f32.mrf.mxu1 }
0x13a9   :  { %v3920_v38 = vpop.f32.mrf.mxu0  ;;  %v3941_v62 = vadd.f32 %v3940_v61, %v3939_v42 }
0x13aa   :  { %v3378_v51 = vadd.f32 %v3919_v43, %v3338_v50  ;;  %v3942_v19 = vpop.f32.mrf.mxu1 }
0x13ab   :  { %v3921_v44 = vpop.f32.mrf.mxu0 }
0x13ac   :  { %v3418_v46 = vadd.f32 %v3941_v62, %v3378_v51  ;;  %v3943_v20 = vpop.f32.mrf.mxu1 }
0x13ae   :  { %3431 = vrot.lane.b32.xlu1 %v3418_v46, %s4321_s8  ;;  %v3424_v52 = vmul.f32 1.442695, %v3418_v46  ;;  %vm3423_vm7 = vcmp.gt.f32.partialorder %v3418_v46, 0.0 }
0x13b0   :  { %4195 = vpow2.f32 %v3424_v52 }
0x13bd   :  { %v4196_v56 = vpop.eup %4195 }
0x13be   :  { %v3752_v59 = vadd.f32 -1.0, %v4196_v56 }
0x13c0   :  { %v3427_v13 = vmul.f32 1.6732632, %v3752_v59 }
0x13c2   :  { %v3428_v5 = vsel %vm3423_vm7, %v3418_v46, %v3427_v13 }
0x13c3   :  { %v3429_v63 = vmul.f32 1.050701, %v3428_v5 }
0x1420   :  { %v3432_v54 = vpop.permute.xlu1 %3431 }
0x1421   :  { %v3434_v47 = vadd.f32 %v3432_v54, %v3429_v63 }
0x1423   :  { %3984 = vmatmul.mubr.msk.f32.vlgmr.msra.gmra.mxu0 %vm1725_vm14, %v3434_v47 }
0x14e3   :  { %v3510_v6 = vpop.f32.mrf.mxu0 }
0x14e4   :  { %v3511_v7 = vadd.f32 %v3753_v14, %v3510_v6 }
0x14e5   :  { %v3985_v53 = vpop.f32.mrf.mxu0 }
0x14e6   :  { %3517 = vrot.lane.b32.xlu1 %v3511_v7, %s4318_s27 }
0x1558   :  { %v3518_v8 = vpop.permute.xlu1 %3517 }
0x1559   :  { %3521 = vst.msk [vmem:[%s4715_s6] sm:$0xff] %vm3520_vm8, %v3518_v8 }
0x155a   :  { %3526 = vsyncpa [#allocation4], 1 }
0x155b   :  { %3527 = vsyncpa [#allocation6], 1 }
0x155c   :  { %3528 = vsyncpa [#allocation9], 1 }

</bundles_post_ra>
